<compile_context>
chip_gen: v7x
topology: tpu7x:2x2x1
jax: 0.10.0
libtpu: 0.0.40
codegen_flags: <defaults>
</compile_context>

<pallas_src>
import math

import jax
import jax.numpy as jnp
from jax import lax
from jax.experimental import pallas as pl
from jax.experimental.pallas import tpu as pltpu

NEG_INF = -1e30


# ----------------------------------------------------------------------------
# Kernel 1: fused QKV projection + rotary embedding, G heads per grid step.
# grid = (batch, head_group, seq_tile); fully independent -> all "parallel".
# Weights are pre-packed as (H/G, D, G*3*Dh) so each step does one wide matmul
# and only DMAs the weight slab it needs.
# ----------------------------------------------------------------------------
def qkv_rope_kernel(x_ref, w_ref, cos_ref, sin_ref, q_ref, k_ref, v_ref):
    G = q_ref.shape[1]
    Dh = q_ref.shape[-1]

    x = x_ref[0]                                   # (sT, D)        bf16
    w = w_ref[0]                                   # (D, G*3*Dh)    bf16
    # One wide bf16 matmul (f32 accumulation); x tile re-read only H/G times.
    qkv = jnp.dot(x, w, preferred_element_type=jnp.float32)   # (sT, G*3*Dh) f32

    cos = cos_ref[...]                             # (sT, Dh) f32
    sin_rot = sin_ref[...]                         # (sT, Dh) f32, sign-folded

    def rope(t):
        # rotate_half(t)*sin == roll(t, Dh/2, lanes) * sin_rot  (XLU, no concat)
        # f32 elementwise (v5e has no bf16 VPU); cast only at the store.
        return t * cos + pltpu.roll(t, Dh // 2, 1) * sin_rot

    for g in range(G):                             # static, small unroll
        base = g * 3 * Dh                          # 128-lane aligned slices
        q = qkv[:, base:base + Dh]
        k = qkv[:, base + Dh:base + 2 * Dh]
        v = qkv[:, base + 2 * Dh:base + 3 * Dh]
        q_ref[0, g] = rope(q).astype(q_ref.dtype)
        k_ref[0, g] = rope(k).astype(k_ref.dtype)
        v_ref[0, g] = v.astype(v_ref.dtype)


def qkv_rope(x, w_qkv_g, cos, sin_rot, *, seq_tile, head_group):
    B, L, D = x.shape
    nG = w_qkv_g.shape[0]
    G = head_group
    Dh = w_qkv_g.shape[2] // (3 * G)
    H = nG * G
    assert L % seq_tile == 0 and seq_tile % 16 == 0   # bf16 sublane tile = 16
    nS = L // seq_tile

    x_spec = pl.BlockSpec((1, seq_tile, D), lambda b, hg, s: (b, s, 0))
    w_spec = pl.BlockSpec((1, D, G * 3 * Dh), lambda b, hg, s: (hg, 0, 0))
    tbl_spec = pl.BlockSpec((seq_tile, Dh), lambda b, hg, s: (s, 0))
    out_spec = pl.BlockSpec((1, G, seq_tile, Dh), lambda b, hg, s: (b, hg, s, 0))
    out_sds = jax.ShapeDtypeStruct((B, H, L, Dh), jnp.bfloat16)

    cost = pl.CostEstimate(
        flops=int(2 * B * L * D * 3 * H * Dh + 6 * B * L * H * Dh),
        transcendentals=0,
        bytes_accessed=int(2 * x.size * nG + 2 * w_qkv_g.size * B * nS
                           + 3 * 2 * B * H * L * Dh
                           + 4 * (cos.size + sin_rot.size)))

    return pl.pallas_call(
        qkv_rope_kernel,
        out_shape=(out_sds, out_sds, out_sds),
        grid_spec=pltpu.PrefetchScalarGridSpec(
            num_scalar_prefetch=0,
            grid=(B, nG, nS),
            in_specs=[x_spec, w_spec, tbl_spec, tbl_spec],
            out_specs=(out_spec, out_spec, out_spec),
        ),
        compiler_params=pltpu.CompilerParams(
            dimension_semantics=("parallel", "parallel", "parallel")),
        cost_estimate=cost,
    )(x, w_qkv_g, cos, sin_rot)


# ----------------------------------------------------------------------------
# Kernel 2: flash attention (causal, online softmax), bf16 operands.
# grid = (batch, head, q_tile, kv_tile); kv is the reduction axis (last,
# "arbitrary"); f32 state lives in VMEM scratch across kv tiles.
# Output is written directly in (B, L, H*Dh) layout for the out projection.
# ----------------------------------------------------------------------------
def flash_kernel(q_ref, k_ref, v_ref, o_ref, m_scr, l_scr, acc_scr):
    qi = pl.program_id(2)
    ki = pl.program_id(3)
    nk = pl.num_programs(3)
    tq = q_ref.shape[2]
    tk = k_ref.shape[2]
    q_start = qi * tq
    k_start = ki * tk

    @pl.when(ki == 0)
    def _():
        m_scr[...] = jnp.full_like(m_scr, NEG_INF)
        l_scr[...] = jnp.zeros_like(l_scr)
        acc_scr[...] = jnp.zeros_like(acc_scr)

    live = k_start <= q_start + (tq - 1)          # at least one visible key
    cross = k_start + (tk - 1) > q_start          # tile crosses the diagonal

    def update(masked):
        q = q_ref[0, 0]                            # bf16 (tq, Dh); scale folded
        k = k_ref[0, 0]                            # bf16 (tk, Dh)
        v = v_ref[0, 0]                            # bf16 (tk, Dh)
        s = lax.dot_general(q, k, (((1,), (1,)), ((), ())),
                            preferred_element_type=jnp.float32)   # (tq, tk) f32
        if masked:   # only diagonal-crossing tiles pay for the iota/where
            q_pos = q_start + lax.broadcasted_iota(jnp.int32, (tq, tk), 0)
            k_pos = k_start + lax.broadcasted_iota(jnp.int32, (tq, tk), 1)
            s = jnp.where(q_pos >= k_pos, s, NEG_INF)

        m_prev = m_scr[...]                                        # (tq, Dh) f32
        m_new = jnp.maximum(m_prev, s.max(axis=-1, keepdims=True))
        alpha = jnp.exp(m_prev - m_new)                            # lane-dense
        p = jnp.exp(s - m_new[:, :1])                              # (tq, tk) f32
        l_scr[...] = alpha * l_scr[...] + p.sum(axis=-1, keepdims=True)
        acc_scr[...] = alpha * acc_scr[...] + jnp.dot(
            p.astype(v.dtype), v, preferred_element_type=jnp.float32)
        m_scr[...] = m_new

    @pl.when(live & cross)
    def _():
        update(masked=True)

    @pl.when(live & jnp.logical_not(cross))
    def _():
        update(masked=False)

    @pl.when(ki == nk - 1)
    def _():
        inv_l = pl.reciprocal(l_scr[...], approx=True)   # EUP slot, free-ish
        o_ref[0] = (acc_scr[...] * inv_l).astype(o_ref.dtype)


def flash_attention(q, k, v, *, q_tile, kv_tile):
    B, H, L, Dh = q.shape
    assert Dh % 128 == 0, "head_dim must be lane-aligned (multiple of 128)"
    assert L % q_tile == 0 and L % kv_tile == 0
    assert q_tile % 16 == 0 and kv_tile % 16 == 0     # bf16 sublane tile = 16
    nq, nk = L // q_tile, L // kv_tile

    q_spec = pl.BlockSpec((1, 1, q_tile, Dh), lambda b, h, qi, ki: (b, h, qi, 0))

    def kv_index(b, h, qi, ki):
        # Clamp to the last causally-visible kv block: dead steps alias the
        # already-fetched block, so the pipeline skips their K/V DMA entirely.
        last = (qi * q_tile + (q_tile - 1)) // kv_tile
        return (b, h, jnp.minimum(ki, last), 0)

    kv_spec = pl.BlockSpec((1, 1, kv_tile, Dh), kv_index)
    # Write per-head lane blocks of a (B, L, H*Dh) tensor (lane-dense output,
    # and exactly the layout the output projection wants).
    o_spec = pl.BlockSpec((1, q_tile, Dh), lambda b, h, qi, ki: (b, qi, h))

    cost = pl.CostEstimate(
        flops=int(4 * B * H * L * L * Dh),
        transcendentals=int(B * H * L * L),
        bytes_accessed=int(2 * (q.size + k.size + v.size) + 2 * B * L * H * Dh))

    return pl.pallas_call(
        flash_kernel,
        out_shape=jax.ShapeDtypeStruct((B, L, H * Dh), jnp.bfloat16),
        grid_spec=pltpu.PrefetchScalarGridSpec(
            num_scalar_prefetch=0,
            grid=(B, H, nq, nk),
            in_specs=[q_spec, kv_spec, kv_spec],
            out_specs=o_spec,
            scratch_shapes=[pltpu.VMEM((q_tile, Dh), jnp.float32),   # m (lane-dense)
                            pltpu.VMEM((q_tile, Dh), jnp.float32),   # l (lane-dense)
                            pltpu.VMEM((q_tile, Dh), jnp.float32)],  # acc
        ),
        compiler_params=pltpu.CompilerParams(
            dimension_semantics=("parallel", "parallel", "parallel", "arbitrary")),
        cost_estimate=cost,
    )(q, k, v)


# ----------------------------------------------------------------------------
# Kernel 3: output projection — plain tiled matmul with deep K = H*Dh
# contraction (no per-head reduction loop thanks to the flash output layout).
# grid = (batch, seq_tile, d_tile, k_tile); K is the reduction axis (last).
# ----------------------------------------------------------------------------
def out_proj_kernel(a_ref, w_ref, o_ref, acc_ref):
    ki = pl.program_id(3)

    @pl.when(ki == 0)
    def _():
        acc_ref[...] = jnp.zeros_like(acc_ref)

    acc_ref[...] += jnp.dot(a_ref[0], w_ref[...],
                            preferred_element_type=jnp.float32)

    @pl.when(ki == pl.num_programs(3) - 1)
    def _():
        o_ref[0] = acc_ref[...].astype(o_ref.dtype)


def out_proj(attn, w_out, *, seq_tile, d_tile=None, k_tile=None,
             out_dtype=jnp.float32):
    B, L, K = attn.shape                       # K = H * Dh
    D = w_out.shape[1]
    d_tile = d_tile or min(D, 512)
    k_tile = k_tile or min(K, 512)
    assert L % seq_tile == 0 and seq_tile % 16 == 0
    assert D % d_tile == 0 and K % k_tile == 0
    nS, nD, nK = L // seq_tile, D // d_tile, K // k_tile

    a_spec = pl.BlockSpec((1, seq_tile, k_tile), lambda b, s, d, k: (b, s, k))
    w_spec = pl.BlockSpec((k_tile, d_tile), lambda b, s, d, k: (k, d))
    o_spec = pl.BlockSpec((1, seq_tile, d_tile), lambda b, s, d, k: (b, s, d))

    cost = pl.CostEstimate(
        flops=int(2 * B * L * K * D),
        transcendentals=0,
        bytes_accessed=int(2 * attn.size + 2 * w_out.size * B * nS
                           + 4 * B * L * D))

    return pl.pallas_call(
        out_proj_kernel,
        out_shape=jax.ShapeDtypeStruct((B, L, D), out_dtype),
        grid_spec=pltpu.PrefetchScalarGridSpec(
            num_scalar_prefetch=0,
            grid=(B, nS, nD, nK),
            in_specs=[a_spec, w_spec],
            out_specs=o_spec,
            scratch_shapes=[pltpu.VMEM((seq_tile, d_tile), jnp.float32)],
        ),
        compiler_params=pltpu.CompilerParams(
            dimension_semantics=("parallel", "parallel", "parallel", "arbitrary")),
        cost_estimate=cost,
    )(attn, w_out)


# ----------------------------------------------------------------------------
# Parameter construction / layout prep / full forward
# ----------------------------------------------------------------------------
def init_params(key, *, dim, n_heads, seq_len, layer_id=0):
    Dh = dim // n_heads
    k_in, k_out = jax.random.split(key)
    std_in = 1.0 / math.sqrt(dim)
    # pre-transposed so kernels compute x @ W directly (== PyTorch x @ W.T)
    w_in = std_in * jax.random.truncated_normal(
        k_in, -3.0, 3.0, (dim, 3 * n_heads * Dh), jnp.float32)
    std_out = std_in / math.sqrt(2 * (layer_id + 1))
    w_out = std_out * jax.random.truncated_normal(
        k_out, -3.0, 3.0, (n_heads * Dh, dim), jnp.float32)

    # rotary tables (GPT-NeoX / xformers style: emb = cat(freqs, freqs))
    inv_freq = 1.0 / (10000.0 ** (jnp.arange(0, Dh, 2, dtype=jnp.float32) / Dh))
    t = jnp.arange(seq_len, dtype=jnp.float32)
    freqs = jnp.outer(t, inv_freq)                      # (L, Dh/2)
    emb = jnp.concatenate([freqs, freqs], axis=-1)      # (L, Dh)
    return dict(w_in=w_in, w_out=w_out, cos=jnp.cos(emb), sin=jnp.sin(emb),
                n_heads=n_heads, head_dim=Dh)


def prepare_kernel_params(params, *, head_group=None):
    H, Dh = params['n_heads'], params['head_dim']
    D = params['w_in'].shape[0]
    G = head_group or (2 if H % 2 == 0 else 1)
    assert H % G == 0
    scale = 1.0 / math.sqrt(Dh)

    # (D, 3*H*Dh) -> fold attention scale into W_q (RoPE is linear), then pack
    # per head-group: (H/G, D, G*3*Dh) with per-head [q_h | k_h | v_h] columns.
    w4 = params['w_in'].reshape(D, 3, H, Dh)
    w4 = w4.at[:, 0].multiply(scale)                    # scale the q columns
    w_h = w4.transpose(2, 0, 1, 3).reshape(H, D, 3 * Dh)
    w_qkv_g = (w_h.reshape(H // G, G, D, 3 * Dh)
                  .transpose(0, 2, 1, 3)
                  .reshape(H // G, D, G * 3 * Dh)).astype(jnp.bfloat16)

    w_out = params['w_out'].astype(jnp.bfloat16)        # (H*Dh, D)

    half = Dh // 2
    sin = params['sin']
    sin_rot = jnp.concatenate([-sin[:, :half], sin[:, half:]], axis=-1)
    return dict(w_qkv_g=w_qkv_g, w_out=w_out, cos=params['cos'],
                sin_rot=sin_rot, head_group=G)


def custom_attn_forward(x, params, *, seq_tile, q_tile, kv_tile,
                        head_group=None, out_seq_tile=None):
    """Matches CustomAttn.forward(x, is_causal=True, past_key_value=None,
    use_cache=False) -> (out_proj(attn(x)), None)."""
    # TODO(synk): kv-cache decode path (past_key_value / use_cache=True),
    # is_causal=False and apply_qk_norm=True are not implemented; only the
    # default training path is.
    kp = prepare_kernel_params(params, head_group=head_group)
    xb = x.astype(jnp.bfloat16)
    q, k, v = qkv_rope(xb, kp['w_qkv_g'], kp['cos'], kp['sin_rot'],
                       seq_tile=seq_tile, head_group=kp['head_group'])
    attn = flash_attention(q, k, v, q_tile=q_tile, kv_tile=kv_tile)
    out = out_proj(attn, kp['w_out'], seq_tile=out_seq_tile or seq_tile,
                   out_dtype=x.dtype)
    return out, None


# ----------------------------------------------------------------------------
# Pure-JAX reference for the correctness check.  Math is f32 but operands are
# bf16-rounded (matching the kernels' MXU inputs) so the comparison isolates
# kernel errors rather than bf16 quantization of the inputs.
# ----------------------------------------------------------------------------
def ref_forward(x, params):
    B, L, D = x.shape
    H, Dh = params['n_heads'], params['head_dim']
    xq = x.astype(jnp.bfloat16).astype(jnp.float32)
    w_in = params['w_in'].astype(jnp.bfloat16).astype(jnp.float32)
    w_out = params['w_out'].astype(jnp.bfloat16).astype(jnp.float32)

    qkv = xq @ w_in
    q, k, v = jnp.split(qkv, 3, axis=-1)
    q = q.reshape(B, L, H, Dh)
    k = k.reshape(B, L, H, Dh)
    v = v.reshape(B, L, H, Dh)

    cos = params['cos'][None, :, None, :]
    sin = params['sin'][None, :, None, :]

    def rope(t):
        t1, t2 = t[..., :Dh // 2], t[..., Dh // 2:]
        rot = jnp.concatenate([-t2, t1], axis=-1)
        return t * cos + rot * sin

    q, k = rope(q), rope(k)
    scale = 1.0 / math.sqrt(Dh)
    s = jnp.einsum('blhd,bmhd->bhlm', q, k) * scale
    mask = jnp.tril(jnp.ones((L, L), bool))
    s = jnp.where(mask[None, None], s, -jnp.inf)
    p = jax.nn.softmax(s, axis=-1)
    o = jnp.einsum('bhlm,bmhd->blhd', p, v).reshape(B, L, H * Dh)
    return o @ w_out


if __name__ == "__main__":
    # Small shapes consistent with the module (dim = n_heads * head_dim).
    B, L, D, H = 2, 64, 512, 4          # head_dim = 128 (lane-aligned)
    seq_tile = q_tile = kv_tile = 32    # multi-tile paths; >=16 for bf16 blocks

    key = jax.random.PRNGKey(0)
    kx, kp = jax.random.split(key)
    x = jax.random.normal(kx, (B, L, D), jnp.float32)
    params = init_params(kp, dim=D, n_heads=H, seq_len=L, layer_id=0)

    out, cache = custom_attn_forward(x, params, seq_tile=seq_tile,
                                     q_tile=q_tile, kv_tile=kv_tile,
                                     head_group=2, out_seq_tile=64)
    out = jax.block_until_ready(out)

    assert out.shape == (B, L, D)
    assert cache is None
    ref = ref_forward(x, params)
    max_err = float(jnp.max(jnp.abs(out - ref)))
    # bf16 operands / intermediates -> loosened tolerance vs the f32-math ref.
    assert jnp.allclose(out, ref, atol=5e-2, rtol=5e-2), max_err
    print("KERNEL_OK")
</pallas_src>

<mosaic_0001>
module attributes {stable_mosaic.version = 11 : i64} {
  func.func @qkv_rope_kernel(%arg0: i32, %arg1: i32, %arg2: i32, %arg3: memref<1x32x512xbf16, #tpu.memory_space<vmem>>, %arg4: memref<1x512x768xbf16, #tpu.memory_space<vmem>>, %arg5: memref<32x128xf32, #tpu.memory_space<vmem>>, %arg6: memref<32x128xf32, #tpu.memory_space<vmem>>, %arg7: memref<1x2x32x128xbf16, #tpu.memory_space<vmem>>, %arg8: memref<1x2x32x128xbf16, #tpu.memory_space<vmem>>, %arg9: memref<1x2x32x128xbf16, #tpu.memory_space<vmem>>) attributes {dimension_semantics = [#tpu.dimension_semantics<parallel>, #tpu.dimension_semantics<parallel>, #tpu.dimension_semantics<parallel>], iteration_bounds = array<i64: 2, 2, 2>, scalar_prefetch = 0 : i64, scratch_operands = 0 : i64, tpu.core_type = #tpu.core_type<tc>, window_params = [{transform_indices = @transform_0, window_bounds = array<i64: 1, 32, 512>}, {transform_indices = @transform_1, window_bounds = array<i64: 1, 512, 768>}, {transform_indices = @transform_2, window_bounds = array<i64: 32, 128>}, {transform_indices = @transform_3, window_bounds = array<i64: 32, 128>}, {transform_indices = @transform_4, window_bounds = array<i64: 1, 2, 32, 128>}, {transform_indices = @transform_5, window_bounds = array<i64: 1, 2, 32, 128>}, {transform_indices = @transform_6, window_bounds = array<i64: 1, 2, 32, 128>}]} {
    %c0 = arith.constant 0 : index
    %c0_0 = arith.constant 0 : index
    %c0_1 = arith.constant 0 : index
    %0 = vector.load %arg3[%c0, %c0_0, %c0_1] : memref<1x32x512xbf16, #tpu.memory_space<vmem>>, vector<1x32x512xbf16>
    %1 = vector.shape_cast %0 : vector<1x32x512xbf16> to vector<32x512xbf16>
    %c0_2 = arith.constant 0 : index
    %c0_3 = arith.constant 0 : index
    %c0_4 = arith.constant 0 : index
    %2 = vector.load %arg4[%c0_2, %c0_3, %c0_4] : memref<1x512x768xbf16, #tpu.memory_space<vmem>>, vector<1x512x768xbf16>
    %3 = vector.shape_cast %2 : vector<1x512x768xbf16> to vector<512x768xbf16>
    %cst = arith.constant dense<0.000000e+00> : vector<32x768xf32>
    %4 = tpu.matmul %1, %3, %cst {dimension_numbers = #tpu.dot_dimension_numbers<[1], [0], [0], [1], [0, 0, 1, 1], [], []>} : vector<32x512xbf16>, vector<512x768xbf16>, vector<32x768xf32> -> vector<32x768xf32>
    %c0_5 = arith.constant 0 : index
    %c0_6 = arith.constant 0 : index
    %5 = vector.load %arg5[%c0_5, %c0_6] : memref<32x128xf32, #tpu.memory_space<vmem>>, vector<32x128xf32>
    %c0_7 = arith.constant 0 : index
    %c0_8 = arith.constant 0 : index
    %6 = vector.load %arg6[%c0_7, %c0_8] : memref<32x128xf32, #tpu.memory_space<vmem>>, vector<32x128xf32>
    %7 = vector.extract_strided_slice %4 {offsets = [0, 0], sizes = [32, 128], strides = [1, 1]} : vector<32x768xf32> to vector<32x128xf32>
    %8 = vector.extract_strided_slice %4 {offsets = [0, 128], sizes = [32, 128], strides = [1, 1]} : vector<32x768xf32> to vector<32x128xf32>
    %9 = vector.extract_strided_slice %4 {offsets = [0, 256], sizes = [32, 128], strides = [1, 1]} : vector<32x768xf32> to vector<32x128xf32>
    %10 = arith.mulf %7, %5 : vector<32x128xf32>
    %c64_i32 = arith.constant 64 : i32
    %11 = tpu.dynamic_rotate %7 by %c64_i32 dim 1 : vector<32x128xf32>, i32 -> vector<32x128xf32>
    %12 = arith.mulf %11, %6 : vector<32x128xf32>
    %13 = arith.addf %10, %12 : vector<32x128xf32>
    %14 = arith.truncf %13 : vector<32x128xf32> to vector<32x128xbf16>
    %c0_9 = arith.constant 0 : index
    %c0_10 = arith.constant 0 : index
    %c0_11 = arith.constant 0 : index
    %c0_12 = arith.constant 0 : index
    %15 = vector.load %arg7[%c0_9, %c0_10, %c0_11, %c0_12] : memref<1x2x32x128xbf16, #tpu.memory_space<vmem>>, vector<1x1x32x128xbf16>
    %16 = vector.shape_cast %15 : vector<1x1x32x128xbf16> to vector<32x128xbf16>
    %17 = vector.shape_cast %14 : vector<32x128xbf16> to vector<1x1x32x128xbf16>
    tpu.vector_store %arg7[%c0_9, %c0_10, %c0_11, %c0_12], %17 {strides = array<i32>} : memref<1x2x32x128xbf16, #tpu.memory_space<vmem>>, vector<1x1x32x128xbf16>,
    %18 = arith.mulf %8, %5 : vector<32x128xf32>
    %c64_i32_13 = arith.constant 64 : i32
    %19 = tpu.dynamic_rotate %8 by %c64_i32_13 dim 1 : vector<32x128xf32>, i32 -> vector<32x128xf32>
    %20 = arith.mulf %19, %6 : vector<32x128xf32>
    %21 = arith.addf %18, %20 : vector<32x128xf32>
    %22 = arith.truncf %21 : vector<32x128xf32> to vector<32x128xbf16>
    %c0_14 = arith.constant 0 : index
    %c0_15 = arith.constant 0 : index
    %c0_16 = arith.constant 0 : index
    %c0_17 = arith.constant 0 : index
    %23 = vector.load %arg8[%c0_14, %c0_15, %c0_16, %c0_17] : memref<1x2x32x128xbf16, #tpu.memory_space<vmem>>, vector<1x1x32x128xbf16>
    %24 = vector.shape_cast %23 : vector<1x1x32x128xbf16> to vector<32x128xbf16>
    %25 = vector.shape_cast %22 : vector<32x128xbf16> to vector<1x1x32x128xbf16>
    tpu.vector_store %arg8[%c0_14, %c0_15, %c0_16, %c0_17], %25 {strides = array<i32>} : memref<1x2x32x128xbf16, #tpu.memory_space<vmem>>, vector<1x1x32x128xbf16>,
    %26 = arith.truncf %9 : vector<32x128xf32> to vector<32x128xbf16>
    %c0_18 = arith.constant 0 : index
    %c0_19 = arith.constant 0 : index
    %c0_20 = arith.constant 0 : index
    %c0_21 = arith.constant 0 : index
    %27 = vector.load %arg9[%c0_18, %c0_19, %c0_20, %c0_21] : memref<1x2x32x128xbf16, #tpu.memory_space<vmem>>, vector<1x1x32x128xbf16>
    %28 = vector.shape_cast %27 : vector<1x1x32x128xbf16> to vector<32x128xbf16>
    %29 = vector.shape_cast %26 : vector<32x128xbf16> to vector<1x1x32x128xbf16>
    tpu.vector_store %arg9[%c0_18, %c0_19, %c0_20, %c0_21], %29 {strides = array<i32>} : memref<1x2x32x128xbf16, #tpu.memory_space<vmem>>, vector<1x1x32x128xbf16>,
    %30 = vector.extract_strided_slice %4 {offsets = [0, 384], sizes = [32, 128], strides = [1, 1]} : vector<32x768xf32> to vector<32x128xf32>
    %31 = vector.extract_strided_slice %4 {offsets = [0, 512], sizes = [32, 128], strides = [1, 1]} : vector<32x768xf32> to vector<32x128xf32>
    %32 = vector.extract_strided_slice %4 {offsets = [0, 640], sizes = [32, 128], strides = [1, 1]} : vector<32x768xf32> to vector<32x128xf32>
    %33 = arith.mulf %30, %5 : vector<32x128xf32>
    %c64_i32_22 = arith.constant 64 : i32
    %34 = tpu.dynamic_rotate %30 by %c64_i32_22 dim 1 : vector<32x128xf32>, i32 -> vector<32x128xf32>
    %35 = arith.mulf %34, %6 : vector<32x128xf32>
    %36 = arith.addf %33, %35 : vector<32x128xf32>
    %37 = arith.truncf %36 : vector<32x128xf32> to vector<32x128xbf16>
    %c0_23 = arith.constant 0 : index
    %c1 = arith.constant 1 : index
    %c0_24 = arith.constant 0 : index
    %c0_25 = arith.constant 0 : index
    %38 = vector.load %arg7[%c0_23, %c1, %c0_24, %c0_25] : memref<1x2x32x128xbf16, #tpu.memory_space<vmem>>, vector<1x1x32x128xbf16>
    %39 = vector.shape_cast %38 : vector<1x1x32x128xbf16> to vector<32x128xbf16>
    %40 = vector.shape_cast %37 : vector<32x128xbf16> to vector<1x1x32x128xbf16>
    tpu.vector_store %arg7[%c0_23, %c1, %c0_24, %c0_25], %40 {strides = array<i32>} : memref<1x2x32x128xbf16, #tpu.memory_space<vmem>>, vector<1x1x32x128xbf16>,
    %41 = arith.mulf %31, %5 : vector<32x128xf32>
    %c64_i32_26 = arith.constant 64 : i32
    %42 = tpu.dynamic_rotate %31 by %c64_i32_26 dim 1 : vector<32x128xf32>, i32 -> vector<32x128xf32>
    %43 = arith.mulf %42, %6 : vector<32x128xf32>
    %44 = arith.addf %41, %43 : vector<32x128xf32>
    %45 = arith.truncf %44 : vector<32x128xf32> to vector<32x128xbf16>
    %c0_27 = arith.constant 0 : index
    %c1_28 = arith.constant 1 : index
    %c0_29 = arith.constant 0 : index
    %c0_30 = arith.constant 0 : index
    %46 = vector.load %arg8[%c0_27, %c1_28, %c0_29, %c0_30] : memref<1x2x32x128xbf16, #tpu.memory_space<vmem>>, vector<1x1x32x128xbf16>
    %47 = vector.shape_cast %46 : vector<1x1x32x128xbf16> to vector<32x128xbf16>
    %48 = vector.shape_cast %45 : vector<32x128xbf16> to vector<1x1x32x128xbf16>
    tpu.vector_store %arg8[%c0_27, %c1_28, %c0_29, %c0_30], %48 {strides = array<i32>} : memref<1x2x32x128xbf16, #tpu.memory_space<vmem>>, vector<1x1x32x128xbf16>,
    %49 = arith.truncf %32 : vector<32x128xf32> to vector<32x128xbf16>
    %c0_31 = arith.constant 0 : index
    %c1_32 = arith.constant 1 : index
    %c0_33 = arith.constant 0 : index
    %c0_34 = arith.constant 0 : index
    %50 = vector.load %arg9[%c0_31, %c1_32, %c0_33, %c0_34] : memref<1x2x32x128xbf16, #tpu.memory_space<vmem>>, vector<1x1x32x128xbf16>
    %51 = vector.shape_cast %50 : vector<1x1x32x128xbf16> to vector<32x128xbf16>
    %52 = vector.shape_cast %49 : vector<32x128xbf16> to vector<1x1x32x128xbf16>
    tpu.vector_store %arg9[%c0_31, %c1_32, %c0_33, %c0_34], %52 {strides = array<i32>} : memref<1x2x32x128xbf16, #tpu.memory_space<vmem>>, vector<1x1x32x128xbf16>,
    return
  }
  func.func @transform_0(%arg0: i32, %arg1: i32, %arg2: i32) -> (i32, i32, i32) {
    %c0_i32 = arith.constant 0 : i32
    %c0_i32_0 = arith.constant 0 : i32
    return %arg0, %arg2, %c0_i32 : i32, i32, i32
  }
  func.func @transform_1(%arg0: i32, %arg1: i32, %arg2: i32) -> (i32, i32, i32) {
    %c0_i32 = arith.constant 0 : i32
    %c0_i32_0 = arith.constant 0 : i32
    %c0_i32_1 = arith.constant 0 : i32
    return %arg1, %c0_i32, %c0_i32_0 : i32, i32, i32
  }
  func.func @transform_2(%arg0: i32, %arg1: i32, %arg2: i32) -> (i32, i32) {
    %c0_i32 = arith.constant 0 : i32
    %c0_i32_0 = arith.constant 0 : i32
    return %arg2, %c0_i32 : i32, i32
  }
  func.func @transform_3(%arg0: i32, %arg1: i32, %arg2: i32) -> (i32, i32) {
    %c0_i32 = arith.constant 0 : i32
    %c0_i32_0 = arith.constant 0 : i32
    return %arg2, %c0_i32 : i32, i32
  }
  func.func @transform_4(%arg0: i32, %arg1: i32, %arg2: i32) -> (i32, i32, i32, i32) {
    %c0_i32 = arith.constant 0 : i32
    %c0_i32_0 = arith.constant 0 : i32
    return %arg0, %arg1, %arg2, %c0_i32 : i32, i32, i32, i32
  }
  func.func @transform_5(%arg0: i32, %arg1: i32, %arg2: i32) -> (i32, i32, i32, i32) {
    %c0_i32 = arith.constant 0 : i32
    %c0_i32_0 = arith.constant 0 : i32
    return %arg0, %arg1, %arg2, %c0_i32 : i32, i32, i32, i32
  }
  func.func @transform_6(%arg0: i32, %arg1: i32, %arg2: i32) -> (i32, i32, i32, i32) {
    %c0_i32 = arith.constant 0 : i32
    %c0_i32_0 = arith.constant 0 : i32
    return %arg0, %arg1, %arg2, %c0_i32 : i32, i32, i32, i32
  }
}

</mosaic_0001>

<bundles_post_ra>
// kernel: tpu_custom_call.1
= control target key start
LH: loop header
LB: loop body
LE: loop exit
PB: predicated region body
PF: predicated region fallthrough
CT: control target
= control target key end

     0   :  { %s4777_s0 = inlined_call_operand.hbm [shape: bf16[2,64,512], index: 0, kind: input, shape index: {}]   ;;  %s4778_s1 = inlined_call_operand.hbm [shape: bf16[2,512,768], index: 1, kind: input, shape index: {}]   ;;  %s4779_s2 = inlined_call_operand.hbm [shape: f32[64,128], index: 2, kind: input, shape index: {}]   ;;  %s4780_s3 = inlined_call_operand.hbm [shape: f32[64,128], index: 3, kind: input, shape index: {}]   ;;  %s4781_s4 = inlined_call_operand.hbm [shape: bf16[2,4,64,128], index: 4, kind: output, shape index: {0}]   ;;  %s4782_s5 = inlined_call_operand.hbm [shape: bf16[2,4,64,128], index: 5, kind: output, shape index: {1}]   ;;  %s4783_s6 = inlined_call_operand.hbm [shape: bf16[2,4,64,128], index: 6, kind: output, shape index: {2}]  }
   0x1   :  { %4810 = sst [smem:[#allocation44_spill]] %s4777_s0 }
   0x2   :  { %4811 = sst [smem:[#allocation45_spill]] %s4778_s1 }
   0x3   :  { %4812 = sst [smem:[#allocation46_spill]] %s4779_s2 }
   0x4   :  { %4813 = sst [smem:[#allocation47_spill]] %s4780_s3 }
   0x5   :  { %4814 = sst [smem:[#allocation48_spill]] %s4781_s4 }
   0x6   :  { %4815 = sst [smem:[#allocation49_spill]] %s4782_s5 }
   0x7   :  { %4816 = sst [smem:[#allocation50_spill]] %s4783_s6 }
   0x8   :  { %12 = vsyncpa [#allocation3], 0 }
   0x9   :  { %14 = vsyncpa [#allocation3 + $0x1], 0 }
   0xa   :  { %15 = vsyncpa [#allocation6], 0 }
   0xb   :  { %17 = vsyncpa [#allocation6 + $0x1], 0 }
   0xc   :  { %18 = vsyncpa [#allocation9], 0 }
   0xd   :  { %20 = vsyncpa [#allocation9 + $0x1], 0 }
   0xe   :  { %21 = vsyncpa [#allocation4], 0 }
   0xf   :  { %23 = vsyncpa [#allocation4 + $0x1], 0 }
  0x10   :  { %24 = vsyncpa [#allocation12], 0 }
  0x11   :  { %26 = vsyncpa [#allocation12 + $0x1], 0  ;;  %s3871_s21 = smov 0   ;;  %s3873_s22 = smov 0  }
  0x12   :  { %s3875_s23 = smov 0   ;;  %s3877_s24 = smov 0  }
  0x13   :  { %s3879_s25 = smov 0   ;;  %s3881_s26 = smov 0  }
  0x14   :  { %s3883_s27 = smov 0   ;;  %s3885_s28 = smov 0  }
  0x15   :  { %s3887_s29 = smov 0   ;;  %s3889_s30 = smov 0  }
  0x16   :  { %s3891_s7 = smov 0   ;;  %s3893_s8 = smov 0  }
  0x17   :  { %s3895_s9 = smov 0   ;;  %s3897_s10 = smov 0  }
  0x18   :  { %s3899_s11 = smov 0   ;;  %s3901_s12 = smov 0  }
  0x19   :  { %s3903_s13 = smov 0   ;;  %s3905_s14 = smov 0  }
  0x1a   :  { %s3907_s15 = smov 0  }
  0x1b LB: > { %4817 = sst [smem:[#allocation26_spill]] %s3761_s28  ;;  %s3965_s16 = sadd.s32 4294967295, %s3805_s15   ;;  %s3805_s15 = sphi %s3907_s15, %s32_s15   ;;  %s3801_s14 = sphi %s3905_s14, %s4893_s14   ;;  %s3797_s13 = sphi %s3903_s13, %s4902_s13   ;;  %s3793_s12 = sphi %s3901_s12, %s4889_s12   ;;  %s3789_s11 = sphi %s3899_s11, %s4888_s11   ;;  %s3785_s10 = sphi %s3897_s10, %s4901_s10   ;;  %s3781_s9 = sphi %s3895_s9, %s4886_s9   ;;  %s3777_s8 = sphi %s3893_s8, %s4900_s8   ;;  %s3773_s7 = sphi %s3891_s7, %s4899_s7   ;;  %s3769_s30 = sphi %s3889_s30, %s4884_s30   ;;  %s3765_s29 = sphi %s3887_s29, %s4883_s29   ;;  %s3761_s28 = sphi %s3885_s28, %s4882_s28   ;;  %s3757_s27 = sphi %s3883_s27, %s4881_s27   ;;  %s3753_s26 = sphi %s3881_s26, %s4898_s26   ;;  %s3749_s25 = sphi %s3879_s25, %s4897_s25   ;;  %s3745_s24 = sphi %s3877_s24, %s4895_s24   ;;  %s3741_s23 = sphi %s3875_s23, %s4894_s23   ;;  %s3737_s22 = sphi %s3873_s22, %s4892_s22   ;;  %s3733_s21 = sphi %s3871_s21, %s4890_s21  }
  0x1c   : > { %4818 = sst [smem:[#allocation27_spill]] %s3765_s29  ;;  %p4789_p0 = scmp.eq.s32.totalorder %s3805_s15, 0 }
  0x1d   : > { %4819 = sst [smem:[#allocation28_spill]] %s3773_s7  ;;  %p4788_p1 = scmp.eq.s32.totalorder %s3965_s16, 0 }
  0x1e   : > { %4820 = sst [smem:[#allocation29_spill]] %s3781_s9  ;;  %p93_p2 = scmp.ne.s32.totalorder %s3765_s29, %s3761_s28 }
  0x1f   : > { %4821 = sst [smem:[#allocation30_spill]] %s3785_s10  ;;  %p99_p3 = scmp.ne.s32.totalorder %s3761_s28, %s3757_s27 }
  0x20   : > { %4822 = sst [smem:[#allocation31_spill]] %s3789_s11  ;;  %p95_p5 = por %p93_p2, %p4789_p0 }
  0x21   : > { %4823 = sst [smem:[#allocation32_spill]] %s3793_s12  ;;  %p3979_p6 = por %p99_p3, %p4788_p1 }
  0x22   : > { %4824 = sst [smem:[#allocation33_spill]] %s3797_s13  ;;  %p4787_p7 = scmp.lt.s32.totalorder %s3805_s15, 8 }
  0x23   : > { %4825 = sst [smem:[#allocation34_spill]] %s3801_s14  ;;  %s289_s20 = sand.u32 1, %s3805_s15  }
  0x24   : > { %s4826_s19 = scalar_select %p3979_p6, 1, 0 }
  0x25   : > { %s291_s6 = sand.u32 1, %s3765_s29   ;;  %s2975_s4 = smul.u32 24576, %s3797_s13 }
  0x26   : > { %4827 = sst [smem:[#allocation35_spill]] %s4826_s19  ;;  %s2974_s5 = smul.u32 1536, %s291_s6 }
  0x27   : > { %p3989_p8 = pnand %p4787_p7, %p95_p5  ;;  %s4829_s1 = sld [smem:[#allocation45_spill]] }
  0x28   : > { %s293_s10 = scalar_lea.vmem [#allocation5], %s2974_s5  ;;  %s4001_s6 = scalar_lea.sflag [#allocation6], %s289_s20 }
  0x29   : > { %s300_s9 = sshll.u32 %s293_s10, 4  ;;  %p3513_p11 = pneg %p3989_p8  ;;  %s3998_s9 = int_to_ptr.vmem [resolvable:$true] %s300_s9 }
  0x2d   : > { %s3996_s11 = scalar_lea.hbm %s4829_s1, %s2975_s4  ;;  %s3516_s27 = scalar_lea.hbm %s4829_s1, 49152 }
  0x2e   : > { %s3511_s19 = scalar_lea.hbm %s3996_s11, 24576  ;;  %p3517_p2 = scmp.lt.u32.totalorder %s3996_s11, %s4829_s1 }
  0x2f   : > { %p3512_p10 = scmp.ne.s32.totalorder %s3996_s11, %s3511_s19  ;;  %p3518_p3 = scmp.lt.u32.totalorder %s3516_s27, %s3511_s19 }
  0x30   : > { %p3520_p7 = scmp.lt.u32.totalorder %s3511_s19, %s3996_s11 }
  0x31   : > { %p3514_p12 = pnand %p3513_p11, %p3512_p10  ;;  %p3519_p5 = por %p3518_p3, %p3517_p2 }
  0x33   : > { %p3515_p13 = pneg %p3514_p12  ;;  %p3521_p4 = por %p3520_p7, %p3519_p5 }
  0x35   : > { %p3522_p1 = pnand %p3521_p4, %p3515_p13 }
  0x37   : > { %3525 = shalt.err (!%p3522_p1)
}
  0x38   : > { %s3526_s10 = scalar_lea.vmem %s3998_s9, 24576  ;;  %s3807_s20 = smov [#allocation5]  }
  0x39   : > { %p3527_p10 = scmp.ne.s32.totalorder %s3998_s9, %s3526_s10  ;;  %s3531_s4 = sshll.u32 %s3807_s20, 4  ;;  %s3532_s4 = int_to_ptr.vmem [resolvable:$false] %s3531_s4 }
  0x3a   : > { %s3533_s28 = scalar_lea.vmem %s3532_s4, 49152  ;;  %p3534_p9 = scmp.lt.s32.totalorder %s3998_s9, %s3532_s4 }
  0x3b   : > { %p3529_p12 = pnand %p3527_p10, %p3513_p11  ;;  %p3535_p2 = scmp.lt.s32.totalorder %s3533_s28, %s3526_s10 }
  0x3d   : > { %p3530_p0 = pneg %p3529_p12  ;;  %p3536_p3 = por %p3535_p2, %p3534_p9 }
  0x3f   : > { %p3537_p7 = pnand %p3536_p3, %p3530_p0 }
  0x41   : > { %3540 = shalt.err (!%p3537_p7)
}
  0x42   : > { %s3808_s19 = smov 384   ;;  %s3809_s18 = smov 24  }
  0x43   : > { %3015 = dma.hbm_to_vmem [thread:$0]  (!%p3989_p8), %s3996_s11, 24576, %s3998_s9, %s4001_s6, %s3808_s19, %s3808_s19, %s3809_s18  }
  0x44   : > { %p350_p0 = scmp.lt.s32.totalorder %s3805_s15, 9  ;;  %p4830_p1 = scmp.ge.s32.totalorder %s3805_s15, 1 }
  0x45   : > { %s44_s10 = sadd.s32 1, %s3793_s12  ;;  %s51_s20 = sadd.s32 1, %s3801_s14 }
  0x46   : > { %p4032_p4 = pnand %p4830_p1, %p350_p0  ;;  %p45_p9 = scmp.ge.s32.totalorder %s44_s10, 2 }
  0x47   : > { %s60_s4 = sadd.s32 1, %s3777_s8  ;;  %p67_p11 = scmp.ne.s32.totalorder %s3777_s8, %s3773_s7 }
  0x48   : > { %s4831_s27 = scalar_select %p4032_p4, 1, 0 }
  0x49   : > { %s4904_s10 = smov (%p45_p9, %s44_s10), 0  ;;  %s4834_s9 = sadd.s32 1, %s3797_s13 }
  0x4a   : > { %4832 = sst [smem:[#allocation36_spill]] %s4831_s27  ;;  %s4906_s9 = smov (!%p45_p9, %s4834_s9), %s3797_s13 }
  0x4b   : > { %4833 = sst [smem:[#allocation37_spill]] %s4904_s10  ;;  %s4049_s11 = ssub.s32 %s3793_s12, %s4904_s10 }
  0x4c   : > { %p4835_p8 = scmp.eq.s32.totalorder %s3805_s15, 0  ;;  %p49_p5 = scmp.ge.s32.totalorder %s4906_s9, 2 }
  0x4d   : > { %p73_p10 = scmp.ne.s32.totalorder %s3773_s7, %s3769_s30  ;;  %s168_s28 = sadd.s32 1, %s3741_s23 }
  0x4e   : > { %p4053_p13 = por %p4835_p8, %p67_p11  ;;  %s4908_s9 = smov (%p49_p5, %s4906_s9), 0 }
  0x4f   : > { %4837 = sst [smem:[#allocation38_spill]] %s4908_s9  ;;  %s4910_s20 = smov (!%p49_p5, %s51_s20), %s3801_s14 }
  0x50   : > { %p4838_p2 = scmp.eq.s32.totalorder %s3965_s16, 0  ;;  %s83_s18 = ssub.s32 %s3797_s13, %s4908_s9 }
  0x51   : > { %p53_p7 = scmp.ge.s32.totalorder %s4910_s20, 2  ;;  %p84_p0 = scmp.eq.s32.totalorder %s83_s18, 0 }
  0x52   : > { %p4066_p3 = por %p4838_p2, %p73_p10  ;;  %p178_p1 = scmp.ne.s32.totalorder %s3741_s23, %s3737_s22 }
  0x53   : > { %p184_p9 = scmp.ne.s32.totalorder %s3737_s22, %s3733_s21  ;;  %s4912_s20 = smov (%p53_p7, %s4910_s20), 0 }
  0x54   : > { %s4839_s19 = scalar_select %p4066_p3, 1, 0 }
  0x55   : > { %4841 = sst [smem:[#allocation40_spill]] %s4912_s20  ;;  %s4842_s30 = sadd.s32 1, %s3765_s29 }
  0x56   : > { %4840 = sst [smem:[#allocation39_spill]] %s4839_s19  ;;  %s55_s1 = ssub.s32 %s3801_s14, %s4912_s20 }
  0x57   : > { %s4081_s5 = scalar_select %p84_p0, %s3765_s29, %s4842_s30  }
  0x58   : > { %p4844_p11 = scmp.eq.s32.totalorder %s3965_s16, 7  ;;  %s57_s10 = sor.u32 %s4049_s11, %s55_s1 }
  0x59   : > { %4843 = sst [smem:[#allocation41_spill]] %s4081_s5  ;;  %s163_s13 = sor.u32 %s83_s18, %s55_s1 }
  0x5a   : > { %p4087_p8 = por %p4844_p11, %p178_p1  ;;  %p58_p5 = scmp.eq.s32.totalorder %s57_s10, 0 }
  0x5b   : > { %s165_s19 = sor.u32 %s163_s13, %s4049_s11  ;;  %s4847_s7 = sadd.s32 4294967294, %s3805_s15  }
  0x5c   : > { %s4845_s9 = scalar_select %p4087_p8, 1, 0 }
  0x5d   : > { %p166_p10 = scmp.eq.s32.totalorder %s165_s19, 0  ;;  %p185_p2 = scmp.eq.s32.totalorder %s4847_s7, 7 }
  0x5e   : > { %4846 = sst [smem:[#allocation42_spill]] %s4845_s9  ;;  %s265_s20 = sand.u32 1, %s3777_s8  }
  0x5f   : > { %s4096_s27 = scalar_select %p58_p5, %s3777_s8, %s60_s4  }
  0x60   : > { %s4099_s3 = scalar_select %p166_p10, %s3741_s23, %s168_s28  }
  0x61   : > { %4848 = sst [smem:[#allocation43_spill]] %s4096_s27  ;;  %p4104_p7 = por %p185_p2, %p184_p9 }
  0x62   : > { %s2576_s5 = sshll.u32 %s265_s20, 6  ;;  %s2851_s29 = sshll.u32 %s3793_s12, 4 }
  0x63   : > { %s4849_s30 = scalar_select %p4104_p7, 1, 0 }
  0x64   : > { %s2579_s1 = sshll.u32 %s3801_s14, 5  ;;  %s269_s10 = scalar_lea.vmem [#allocation2], %s2576_s5 }
  0x65   : > { %s279_s18 = sshll.u32 %s269_s10, 4  ;;  %s276_s9 = sadd.s32 %s2851_s29, %s2579_s1  ;;  %s4111_s18 = int_to_ptr.vmem [resolvable:$true] %s279_s18 }
  0x66   : > { %s2580_s13 = sshll.u32 %s276_s9, 6  ;;  %p4850_p0 = scmp.lt.s32.totalorder %s3805_s15, 8 }
  0x67   : > { %s4852_s0 = sld [smem:[#allocation44_spill]]  ;;  %s4126_s29 = scalar_lea.sflag [#allocation3], %s265_s20 }
  0x68   : > { %p4117_p1 = pnand %p4850_p0, %p4053_p13 }
  0x6a   : > { %p3543_p13 = pneg %p4117_p1 }
  0x6d   : > { %s4124_s19 = scalar_lea.hbm %s4852_s0, %s2580_s13  ;;  %s3546_s1 = scalar_lea.hbm %s4852_s0, 4096 }
  0x6e   : > { %s3541_s5 = scalar_lea.hbm %s4124_s19, 1024  ;;  %p3547_p10 = scmp.lt.u32.totalorder %s4124_s19, %s4852_s0 }
  0x6f   : > { %p3542_p9 = scmp.ne.s32.totalorder %s4124_s19, %s3541_s5  ;;  %p3548_p2 = scmp.lt.u32.totalorder %s3546_s1, %s3541_s5 }
  0x70   : > { %p3550_p12 = scmp.lt.u32.totalorder %s3541_s5, %s4124_s19 }
  0x71   : > { %p3544_p11 = pnand %p3543_p13, %p3542_p9  ;;  %p3549_p0 = por %p3548_p2, %p3547_p10 }
  0x73   : > { %p3545_p5 = pneg %p3544_p11  ;;  %p3551_p7 = por %p3550_p12, %p3549_p0 }
  0x75   : > { %p3552_p8 = pnand %p3551_p7, %p3545_p5 }
  0x77   : > { %3555 = shalt.err (!%p3552_p8)
}
  0x78   : > { %s3556_s20 = scalar_lea.vmem %s4111_s18, 1024  ;;  %s3810_s4 = smov [#allocation2]  }
  0x79   : > { %p3557_p9 = scmp.ne.s32.totalorder %s4111_s18, %s3556_s20  ;;  %s3561_s28 = sshll.u32 %s3810_s4, 4  ;;  %s3562_s28 = int_to_ptr.vmem [resolvable:$false] %s3561_s28 }
  0x7a   : > { %s3563_s9 = scalar_lea.vmem %s3562_s28, 2048  ;;  %p3564_p3 = scmp.lt.s32.totalorder %s4111_s18, %s3562_s28 }
  0x7b   : > { %p3559_p11 = pnand %p3557_p9, %p3543_p13  ;;  %p3565_p10 = scmp.lt.s32.totalorder %s3563_s9, %s3556_s20 }
  0x7d   : > { %p3560_p6 = pneg %p3559_p11  ;;  %p3566_p2 = por %p3565_p10, %p3564_p3 }
  0x7f   : > { %p3567_p12 = pnand %p3566_p2, %p3560_p6 }
  0x81   : > { %3570 = shalt.err (!%p3567_p12)
}
  0x82   : > { %s3811_s5 = smov 256   ;;  %s3812_s17 = smov 16  }
  0x83   : > { %3012 = dma.hbm_to_vmem [thread:$0]  (!%p4117_p1), %s4124_s19, 1024, %s4111_s18, %s4126_s29, %s3811_s5, %s3811_s5, %s3812_s17  }
  0x84   : > { %s112_s1 = sadd.s32 1, %s3753_s26  ;;  %p119_p6 = scmp.ne.s32.totalorder %s3753_s26, %s3749_s25 }
  0x85   : > { %p4853_p3 = scmp.eq.s32.totalorder %s4049_s11, 0  ;;  %p4854_p8 = scmp.eq.s32.totalorder %s3805_s15, 0 }
  0x86   : > { %p125_p13 = scmp.ne.s32.totalorder %s3749_s25, %s3745_s24  ;;  %s4806_s13 = sand.u32 1, %s3753_s26  }
  0x87   : > { %s4160_s10 = scalar_select %p4853_p3, %s3753_s26, %s112_s1  }
  0x88   : > { %p121_p7 = por %p119_p6, %p4854_p8  ;;  %s2852_s20 = sshll.u32 %s3793_s12, 9 }
  0x89   : > { %p4855_p5 = scmp.eq.s32.totalorder %s3965_s16, 0  ;;  %s4176_s28 = sshll.u32 %s4806_s13, 5 }
  0x8a   : > { %s4857_s2 = sld [smem:[#allocation46_spill]]  ;;  %s314_s24 = scalar_lea.vmem [#allocation7], %s4176_s28 }
  0x8b   : > { %p4170_p0 = por %p125_p13, %p4855_p5  ;;  %s321_s19 = sshll.u32 %s314_s24, 4  ;;  %s4192_s19 = int_to_ptr.vmem [resolvable:$true] %s321_s19 }
  0x8c   : > { %p4858_p1 = scmp.lt.s32.totalorder %s3805_s15, 8 }
  0x8d   : > { %s4856_s4 = scalar_select %p4170_p0, 1, 0 }
  0x8e   : > { %p4188_p9 = pnand %p4858_p1, %p121_p7 }
  0x90   : > { %s4183_s11 = scalar_lea.hbm %s4857_s2, %s2852_s20  ;;  %p3573_p10 = pneg %p4188_p9 }
  0x91   : > { %s3571_s9 = scalar_lea.hbm %s4183_s11, 512  ;;  %s3576_s1 = scalar_lea.hbm %s4857_s2, 1024 }
  0x92   : > { %p3572_p11 = scmp.ne.s32.totalorder %s4183_s11, %s3571_s9  ;;  %p3577_p6 = scmp.lt.u32.totalorder %s4183_s11, %s4857_s2 }
  0x93   : > { %p3578_p3 = scmp.lt.u32.totalorder %s3576_s1, %s3571_s9  ;;  %p3580_p7 = scmp.lt.u32.totalorder %s3571_s9, %s4183_s11 }
  0x94   : > { %p3574_p2 = pnand %p3573_p10, %p3572_p11 }
  0x95   : > { %p3579_p8 = por %p3578_p3, %p3577_p6 }
  0x96   : > { %p3575_p12 = pneg %p3574_p2 }
  0x97   : > { %p3581_p13 = por %p3580_p7, %p3579_p8 }
  0x99   : > { %p3582_p5 = pnand %p3581_p13, %p3575_p12 }
  0x9b   : > { %3585 = shalt.err (!%p3582_p5)
}
  0x9c   : > { %s3586_s24 = scalar_lea.vmem %s4192_s19, 512  ;;  %s3813_s5 = smov [#allocation7]  }
  0x9d   : > { %p3587_p1 = scmp.ne.s32.totalorder %s4192_s19, %s3586_s24  ;;  %s3591_s17 = sshll.u32 %s3813_s5, 4  ;;  %s3592_s17 = int_to_ptr.vmem [resolvable:$false] %s3591_s17 }
  0x9e   : > { %s3593_s18 = scalar_lea.vmem %s3592_s17, 1024  ;;  %p3594_p0 = scmp.lt.s32.totalorder %s4192_s19, %s3592_s17 }
  0x9f   : > { %p3589_p11 = pnand %p3587_p1, %p3573_p10  ;;  %p3595_p6 = scmp.lt.s32.totalorder %s3593_s18, %s3586_s24 }
  0xa1   : > { %p3590_p2 = pneg %p3589_p11  ;;  %p3596_p3 = por %p3595_p6, %p3594_p0 }
  0xa3   : > { %p3597_p8 = pnand %p3596_p3, %p3590_p2 }
  0xa5   : > { %3600 = shalt.err (!%p3597_p8)
}
  0xa6   : > { %s3814_s9 = smov 128   ;;  %s3815_s1 = smov 8  }
  0xa7   : > { %3018 = dma.hbm_to_vmem [thread:$0]  (!%p4188_p9), %s4183_s11, 512, %s4192_s19, %s4001_s6, %s3814_s9, %s3814_s9, %s3815_s1  }
  0xa8   : > { %s4860_s5 = sld [smem:[#allocation47_spill]]  ;;  %s335_s18 = scalar_lea.vmem [#allocation8], %s4176_s28 }
  0xa9   : > { %s342_s13 = sshll.u32 %s335_s18, 4  ;;  %s4861_s0 = sand.u32 1, %s3753_s26   ;;  %s4231_s13 = int_to_ptr.vmem [resolvable:$true] %s342_s13 }
  0xaa   : > { %s4235_s2 = scalar_lea.sflag [#allocation9], %s4861_s0 }
  0xae   : > { %s4228_s17 = scalar_lea.hbm %s4860_s5, %s2852_s20  ;;  %s3606_s11 = scalar_lea.hbm %s4860_s5, 1024 }
  0xaf   : > { %s3601_s14 = scalar_lea.hbm %s4228_s17, 512  ;;  %p3607_p13 = scmp.lt.u32.totalorder %s4228_s17, %s4860_s5 }
  0xb0   : > { %p3602_p0 = scmp.ne.s32.totalorder %s4228_s17, %s3601_s14  ;;  %p3608_p5 = scmp.lt.u32.totalorder %s3606_s11, %s3601_s14 }
  0xb1   : > { %p3610_p11 = scmp.lt.u32.totalorder %s3601_s14, %s4228_s17 }
  0xb2   : > { %p3604_p12 = pnand %p3602_p0, %p3573_p10  ;;  %p3609_p1 = por %p3608_p5, %p3607_p13 }
  0xb4   : > { %p3605_p7 = pneg %p3604_p12  ;;  %p3611_p2 = por %p3610_p11, %p3609_p1 }
  0xb6   : > { %p3612_p6 = pnand %p3611_p2, %p3605_p7 }
  0xb8   : > { %3615 = shalt.err (!%p3612_p6)
}
  0xb9   : > { %s3616_s0 = scalar_lea.vmem %s4231_s13, 512  ;;  %s3816_s28 = smov [#allocation8]  }
  0xba   : > { %p3617_p3 = scmp.ne.s32.totalorder %s4231_s13, %s3616_s0  ;;  %s3621_s24 = sshll.u32 %s3816_s28, 4  ;;  %s3622_s24 = int_to_ptr.vmem [resolvable:$false] %s3621_s24 }
  0xbb   : > { %s3623_s18 = scalar_lea.vmem %s3622_s24, 1024  ;;  %p3624_p12 = scmp.lt.s32.totalorder %s4231_s13, %s3622_s24 }
  0xbc   : > { %p3619_p8 = pnand %p3617_p3, %p3573_p10  ;;  %p3625_p13 = scmp.lt.s32.totalorder %s3623_s18, %s3616_s0 }
  0xbe   : > { %p3620_p0 = pneg %p3619_p8  ;;  %p3626_p5 = por %p3625_p13, %p3624_p12 }
  0xc0   : > { %p3627_p1 = pnand %p3626_p5, %p3620_p0 }
  0xc2   : > { %3630 = shalt.err (!%p3627_p1)
}
  0xc3   : > { %3021 = dma.hbm_to_vmem [thread:$0]  (!%p4188_p9), %s4228_s17, 512, %s4231_s13, %s4235_s2, %s3814_s9, %s3814_s9, %s3815_s1  }
  0xc4   : > { %354 = sbr.rel (%p4032_p4) target bundleno = 802 (0x322), region = 36  ;;  %s4863_s6 = sld [smem:[#allocation28_spill]] (!%p4032_p4) }
  0xc5   : > { %s4864_s20 = sld [smem:[#allocation39_spill]] (!%p4032_p4) }
  0xca   : > { %s356_s11 = sand.u32 (!%p4032_p4), 1, %s4863_s6  }
  0xcb   : > { %s2589_s19 = sshll.u32 %s356_s11, 6  ;;  %s357_s7 = scalar_lea.sflag [#allocation3], %s356_s11 }
  0xcc   : > { %s4267_s0 = scalar_lea.vmem [#allocation2], %s2589_s19  ;;  %p4865_p10 = scmp.ne.s32.totalorder %s4864_s20, 0 }
  0xce   : > { %3708 = dma.done.wait (%p4865_p10), %s357_s7, 1024  }
  0xcf   : > { %3710 = vsyncadd (%p4865_p10), %s357_s7, 4294966272  ;;  %s4866_s29 = sld [smem:[#allocation26_spill]]  ;;  %s4867_s28 = sld [smem:[#allocation35_spill]] }
  0xd0   : > { %s365_s2 = sand.u32 1, %s3965_s16  }
  0xd1   : > { %s366_s1 = scalar_lea.sflag [#allocation6], %s365_s2 }
  0xd5   : > { %s367_s13 = sand.u32 1, %s4866_s29   ;;  %p4868_p4 = scmp.ne.s32.totalorder %s4867_s28, 0 }
  0xd6   : > { %s2976_s9 = smul.u32 1536, %s367_s13 }
  0xd8   : > { %s4277_s17 = scalar_lea.vmem [#allocation5], %s2976_s9 }
  0xd9   : > { %3712 = dma.done.wait (%p4868_p4), %s366_s1, 24576  }
  0xda   : > { %3714 = vsyncadd (%p4868_p4), %s366_s1, 4294942720  ;;  %s376_s24 = sand.u32 1, %s3749_s25   ;;  %p4869_p9 = scmp.ne.s32.totalorder %s4856_s4, 0 }
  0xdb   : > { %s2590_s18 = sshll.u32 %s376_s24, 5 }
  0xdc   : > { %s4284_s14 = scalar_lea.vmem [#allocation7], %s2590_s18 }
  0xdd   : > { %3716 = dma.done.wait (%p4869_p9), %s366_s1, 512  }
  0xde   : > { %3718 = vsyncadd (%p4869_p9), %s366_s1, 4294966784  ;;  %s384_s6 = scalar_lea.sflag [#allocation9], %s376_s24  ;;  %s4290_s20 = scalar_lea.vmem [#allocation8], %s2590_s18 }
  0xdf   : > { %3720 = dma.done.wait (%p4869_p9), %s384_s6, 512  }
  0xe0   : > { %3722 = vsyncadd (%p4869_p9), %s384_s6, 4294966784  ;;  %v3211_v0 = vld [vmem:[%s4277_s17 + $0x4] ss:$24 sps:$4 sm:$0xff]   ;;  %v3215_v2 = vld [vmem:[%s4277_s17] ss:$24 sps:$4 sm:$0xff]   ;;  %s424_s4 = sand.u32 1, %s3737_s22  }
  0xe1   : > { %v3213_v1 = vld [vmem:[%s4277_s17 + $0x304] ss:$24 sps:$4 sm:$0xff]   ;;  %1650 = vmatprep.subr.bf16.mxu1 %v3211_v0  ;;  %v3216_v3 = vld [vmem:[%s4277_s17 + $0x300] ss:$24 sps:$4 sm:$0xff]   ;;  %v3217_v4 = vld [vmem:[%s4277_s17 + $0x34] ss:$24 sps:$4 sm:$0xff]  }
  0xe2   : > { %1703 = vmatprep.subr.bf16.mxu0 %v3213_v1  ;;  %1651 = vmatpush1.bf16.msra.mxu1 %v3215_v2  ;;  %v3219_v5 = vld [vmem:[%s4277_s17 + $0x334] ss:$24 sps:$4 sm:$0xff]   ;;  %v3221_v6 = vld [vmem:[%s4277_s17 + $0x30] ss:$24 sps:$4 sm:$0xff]   ;;  %v3223_v8 = vld [vmem:[%s4277_s17 + $0x64] ss:$24 sps:$4 sm:$0xff]  }
  0xe3   : > { %1704 = vmatpush1.bf16.msra.mxu0 %v3216_v3  ;;  %1652 = vmatprep.subr.bf16.mxu1 %v3217_v4  ;;  %v3222_v7 = vld [vmem:[%s4277_s17 + $0x330] ss:$24 sps:$4 sm:$0xff]   ;;  %v3225_v9 = vld [vmem:[%s4277_s17 + $0x364] ss:$24 sps:$4 sm:$0xff]   ;;  %v3227_v10 = vld [vmem:[%s4277_s17 + $0x60] ss:$24 sps:$4 sm:$0xff]  }
  0xe4   : > { %1705 = vmatprep.subr.bf16.mxu0 %v3219_v5  ;;  %v3228_v11 = vld [vmem:[%s4277_s17 + $0x360] ss:$24 sps:$4 sm:$0xff]   ;;  %v3229_v12 = vld [vmem:[%s4277_s17 + $0x94] ss:$24 sps:$4 sm:$0xff]   ;;  %v3233_v14 = vld [vmem:[%s4277_s17 + $0x90] ss:$24 sps:$4 sm:$0xff]  }
  0xe5   : > { %v3231_v13 = vld [vmem:[%s4277_s17 + $0x394] ss:$24 sps:$4 sm:$0xff]   ;;  %v3234_v15 = vld [vmem:[%s4277_s17 + $0x390] ss:$24 sps:$4 sm:$0xff]   ;;  %v3235_v16 = vld [vmem:[%s4277_s17 + $0xc4] ss:$24 sps:$4 sm:$0xff]  }
  0xe6   : > { %1653 = vmatpush1.bf16.msra.mxu1 %v3221_v6  ;;  %v3237_v17 = vld [vmem:[%s4277_s17 + $0x3c4] ss:$24 sps:$4 sm:$0xff]   ;;  %v3239_v18 = vld [vmem:[%s4277_s17 + $0xc0] ss:$24 sps:$4 sm:$0xff]   ;;  %v3241_v20 = vld [vmem:[%s4277_s17 + $0xf4] ss:$24 sps:$4 sm:$0xff]  }
  0xe7   : > { %1706 = vmatpush1.bf16.msra.mxu0 %v3222_v7  ;;  %1654 = vmatprep.subr.bf16.mxu1 %v3223_v8  ;;  %v3240_v19 = vld [vmem:[%s4277_s17 + $0x3c0] ss:$24 sps:$4 sm:$0xff]   ;;  %v3243_v21 = vld [vmem:[%s4277_s17 + $0x3f4] ss:$24 sps:$4 sm:$0xff]   ;;  %v3245_v22 = vld [vmem:[%s4277_s17 + $0xf0] ss:$24 sps:$4 sm:$0xff]  }
  0xe8   : > { %1707 = vmatprep.subr.bf16.mxu0 %v3225_v9  ;;  %v3246_v23 = vld [vmem:[%s4277_s17 + $0x3f0] ss:$24 sps:$4 sm:$0xff]   ;;  %v3247_v24 = vld [vmem:[%s4277_s17 + $0x124] ss:$24 sps:$4 sm:$0xff]   ;;  %v3251_v26 = vld [vmem:[%s4277_s17 + $0x120] ss:$24 sps:$4 sm:$0xff]  }
  0xe9   : > { %v3249_v25 = vld [vmem:[%s4277_s17 + $0x424] ss:$24 sps:$4 sm:$0xff]   ;;  %v3252_v27 = vld [vmem:[%s4277_s17 + $0x420] ss:$24 sps:$4 sm:$0xff]   ;;  %v3253_v28 = vld [vmem:[%s4277_s17 + $0x154] ss:$24 sps:$4 sm:$0xff]  }
  0xea   : > { %1655 = vmatpush1.bf16.msra.mxu1 %v3227_v10  ;;  %v3255_v29 = vld [vmem:[%s4277_s17 + $0x454] ss:$24 sps:$4 sm:$0xff]   ;;  %v3257_v30 = vld [vmem:[%s4277_s17 + $0x150] ss:$24 sps:$4 sm:$0xff]   ;;  %v3259_v32 = vld [vmem:[%s4277_s17 + $0x184] ss:$24 sps:$4 sm:$0xff]  }
  0xeb   : > { %1708 = vmatpush1.bf16.msra.mxu0 %v3228_v11  ;;  %1656 = vmatprep.subr.bf16.mxu1 %v3229_v12  ;;  %v3258_v31 = vld [vmem:[%s4277_s17 + $0x450] ss:$24 sps:$4 sm:$0xff]   ;;  %v3261_v33 = vld [vmem:[%s4277_s17 + $0x484] ss:$24 sps:$4 sm:$0xff]   ;;  %v3263_v34 = vld [vmem:[%s4277_s17 + $0x180] ss:$24 sps:$4 sm:$0xff]  }
  0xec   : > { %1709 = vmatprep.subr.bf16.mxu0 %v3231_v13  ;;  %v3264_v35 = vld [vmem:[%s4277_s17 + $0x480] ss:$24 sps:$4 sm:$0xff]   ;;  %v3265_v36 = vld [vmem:[%s4277_s17 + $0x1b4] ss:$24 sps:$4 sm:$0xff]   ;;  %v3269_v38 = vld [vmem:[%s4277_s17 + $0x1b0] ss:$24 sps:$4 sm:$0xff]  }
  0xed   : > { %v3267_v37 = vld [vmem:[%s4277_s17 + $0x4b4] ss:$24 sps:$4 sm:$0xff]   ;;  %v3270_v39 = vld [vmem:[%s4277_s17 + $0x4b0] ss:$24 sps:$4 sm:$0xff]   ;;  %v3271_v40 = vld [vmem:[%s4277_s17 + $0x1e4] ss:$24 sps:$4 sm:$0xff]  }
  0xee   : > { %1657 = vmatpush1.bf16.msra.mxu1 %v3233_v14  ;;  %v3273_v41 = vld [vmem:[%s4277_s17 + $0x4e4] ss:$24 sps:$4 sm:$0xff]   ;;  %v3275_v42 = vld [vmem:[%s4277_s17 + $0x1e0] ss:$24 sps:$4 sm:$0xff]   ;;  %v3277_v44 = vld [vmem:[%s4277_s17 + $0x214] ss:$24 sps:$4 sm:$0xff]  }
  0xef   : > { %1710 = vmatpush1.bf16.msra.mxu0 %v3234_v15  ;;  %1658 = vmatprep.subr.bf16.mxu1 %v3235_v16  ;;  %v3276_v43 = vld [vmem:[%s4277_s17 + $0x4e0] ss:$24 sps:$4 sm:$0xff]   ;;  %v3279_v45 = vld [vmem:[%s4277_s17 + $0x514] ss:$24 sps:$4 sm:$0xff]   ;;  %v3281_v46 = vld [vmem:[%s4277_s17 + $0x210] ss:$24 sps:$4 sm:$0xff]  }
  0xf0   : > { %1711 = vmatprep.subr.bf16.mxu0 %v3237_v17  ;;  %v3282_v47 = vld [vmem:[%s4277_s17 + $0x510] ss:$24 sps:$4 sm:$0xff]   ;;  %v4345_v48 = vld [vmem:[%s4267_s0 + $0x4] ss:$16 sps:$4 sm:$0xff]   ;;  %v4349_v50 = vld [vmem:[%s4267_s0 + $0xc] ss:$16 sps:$4 sm:$0xff]  }
  0xf1   : > { %v3283_v49 = vld [vmem:[%s4277_s17 + $0x244] ss:$24 sps:$4 sm:$0xff]   ;;  %1682 = vmatprep.mubr.bf16.mxu1 %v4345_v48  ;;  %1735 = vmatprep.mubr.bf16.mxu0 %v4349_v50  ;;  %v3287_v52 = vld [vmem:[%s4277_s17 + $0x240] ss:$24 sps:$4 sm:$0xff]   ;;  %v3289_v54 = vld [vmem:[%s4277_s17 + $0x274] ss:$24 sps:$4 sm:$0xff]  }
  0xf2   : > { %1659 = vmatpush1.bf16.msra.mxu1 %v3239_v18  ;;  %v3285_v51 = vld [vmem:[%s4277_s17 + $0x544] ss:$24 sps:$4 sm:$0xff]   ;;  %v3288_v53 = vld [vmem:[%s4277_s17 + $0x540] ss:$24 sps:$4 sm:$0xff]   ;;  %v3291_v55 = vld [vmem:[%s4277_s17 + $0x574] ss:$24 sps:$4 sm:$0xff]  }
  0xf3   : > { %1712 = vmatpush1.bf16.msra.mxu0 %v3240_v19  ;;  %1660 = vmatprep.subr.bf16.mxu1 %v3241_v20  ;;  %v3293_v56 = vld [vmem:[%s4277_s17 + $0x270] ss:$24 sps:$4 sm:$0xff]   ;;  %v3295_v58 = vld [vmem:[%s4277_s17 + $0x2a4] ss:$24 sps:$4 sm:$0xff]   ;;  %v3299_v60 = vld [vmem:[%s4277_s17 + $0x2a0] ss:$24 sps:$4 sm:$0xff]  }
  0xf4   : > { %1713 = vmatprep.subr.bf16.mxu0 %v3243_v21  ;;  %v3294_v57 = vld [vmem:[%s4277_s17 + $0x570] ss:$24 sps:$4 sm:$0xff]   ;;  %v3297_v59 = vld [vmem:[%s4277_s17 + $0x5a4] ss:$24 sps:$4 sm:$0xff]   ;;  %v3300_v61 = vld [vmem:[%s4277_s17 + $0x5a0] ss:$24 sps:$4 sm:$0xff]  }
  0xf5   : > { %v3301_v62 = vld [vmem:[%s4277_s17 + $0x2d4] ss:$24 sps:$4 sm:$0xff]   ;;  %v3305_v0 = vld [vmem:[%s4277_s17 + $0x2d0] ss:$24 sps:$4 sm:$0xff]   ;;  %v3324_v9 = vld [vmem:[%s4277_s17 + $0x44] ss:$24 sps:$4 sm:$0xff]  }
  0xf6   : > { %1661 = vmatpush1.bf16.msra.mxu1 %v3245_v22  ;;  %v3303_v63 = vld [vmem:[%s4277_s17 + $0x5d4] ss:$24 sps:$4 sm:$0xff]   ;;  %v3306_v1 = vld [vmem:[%s4277_s17 + $0x5d0] ss:$24 sps:$4 sm:$0xff]   ;;  %v3322_v13 = vld [vmem:[%s4277_s17 + $0x40] ss:$24 sps:$4 sm:$0xff]  }
  0xf7   : > { %1714 = vmatpush1.bf16.msra.mxu0 %v3246_v23  ;;  %1662 = vmatprep.subr.bf16.mxu1 %v3247_v24  ;;  %v3315_v2 = vld [vmem:[%s4277_s17 + $0xc] ss:$24 sps:$4 sm:$0xff]   ;;  %v4371_v4 = vld [vmem:[%s4267_s0] ss:$16 sps:$4 sm:$0xff]   ;;  %v4374_v5 = vld [vmem:[%s4267_s0 + $0x8] ss:$16 sps:$4 sm:$0xff]  }
  0xf8   : > { %1715 = vmatprep.subr.bf16.mxu0 %v3249_v25  ;;  %v3318_v3 = vld [vmem:[%s4277_s17 + $0x14] ss:$24 sps:$4 sm:$0xff]   ;;  %v3313_v6 = vld [vmem:[%s4277_s17 + $0x8] ss:$24 sps:$4 sm:$0xff]   ;;  %v3319_v12 = vld [vmem:[%s4277_s17 + $0x38] ss:$24 sps:$4 sm:$0xff]  }
  0xf9   : > { %v3316_v7 = vld [vmem:[%s4277_s17 + $0x10] ss:$24 sps:$4 sm:$0xff]   ;;  %v3321_v8 = vld [vmem:[%s4277_s17 + $0x3c] ss:$24 sps:$4 sm:$0xff]   ;;  %v3333_v14 = vld [vmem:[%s4277_s17 + $0x6c] ss:$24 sps:$4 sm:$0xff]  }
  0xfa   : > { %1663 = vmatpush1.bf16.msra.mxu1 %v3251_v26  ;;  %v4381_v10 = vld [vmem:[%s4267_s0 + $0x24] ss:$16 sps:$4 sm:$0xff]   ;;  %v4384_v11 = vld [vmem:[%s4267_s0 + $0x2c] ss:$16 sps:$4 sm:$0xff]   ;;  %v4395_v16 = vld [vmem:[%s4267_s0 + $0x20] ss:$16 sps:$4 sm:$0xff]  }
  0xfb   : > { %1716 = vmatpush1.bf16.msra.mxu0 %v3252_v27  ;;  %1664 = vmatprep.subr.bf16.mxu1 %v3253_v28  ;;  %v3336_v15 = vld [vmem:[%s4277_s17 + $0x74] ss:$24 sps:$4 sm:$0xff]   ;;  %v4398_v17 = vld [vmem:[%s4267_s0 + $0x28] ss:$16 sps:$4 sm:$0xff]   ;;  %v3342_v21 = vld [vmem:[%s4277_s17 + $0xa4] ss:$24 sps:$4 sm:$0xff]  }
  0xfc   : > { %1717 = vmatprep.subr.bf16.mxu0 %v3255_v29  ;;  %v3331_v18 = vld [vmem:[%s4277_s17 + $0x68] ss:$24 sps:$4 sm:$0xff]   ;;  %v3339_v20 = vld [vmem:[%s4277_s17 + $0x9c] ss:$24 sps:$4 sm:$0xff]   ;;  %v3337_v22 = vld [vmem:[%s4277_s17 + $0x98] ss:$24 sps:$4 sm:$0xff]  }
  0xfd   : > { %v3334_v19 = vld [vmem:[%s4277_s17 + $0x70] ss:$24 sps:$4 sm:$0xff]   ;;  %v3340_v23 = vld [vmem:[%s4277_s17 + $0xa0] ss:$24 sps:$4 sm:$0xff]   ;;  %v3345_v24 = vld [vmem:[%s4277_s17 + $0xcc] ss:$24 sps:$4 sm:$0xff]  }
  0xfe   : > { %1665 = vmatpush1.bf16.msra.mxu1 %v3257_v30  ;;  %v3348_v25 = vld [vmem:[%s4277_s17 + $0xd4] ss:$24 sps:$4 sm:$0xff]   ;;  %v3343_v26 = vld [vmem:[%s4277_s17 + $0xc8] ss:$24 sps:$4 sm:$0xff]   ;;  %v3354_v29 = vld [vmem:[%s4277_s17 + $0x104] ss:$24 sps:$4 sm:$0xff]  }
  0xff   : > { %1718 = vmatpush1.bf16.msra.mxu0 %v3258_v31  ;;  %1666 = vmatprep.subr.bf16.mxu1 %v3259_v32  ;;  %v3346_v27 = vld [vmem:[%s4277_s17 + $0xd0] ss:$24 sps:$4 sm:$0xff]   ;;  %v3351_v28 = vld [vmem:[%s4277_s17 + $0xfc] ss:$24 sps:$4 sm:$0xff]   ;;  %v3352_v31 = vld [vmem:[%s4277_s17 + $0x100] ss:$24 sps:$4 sm:$0xff]  }
 0x100   : > { %1719 = vmatprep.subr.bf16.mxu0 %v3261_v33  ;;  %v3349_v30 = vld [vmem:[%s4277_s17 + $0xf8] ss:$24 sps:$4 sm:$0xff]   ;;  %v3357_v32 = vld [vmem:[%s4277_s17 + $0x12c] ss:$24 sps:$4 sm:$0xff]   ;;  %s3817_s11 = smov 64   ;;  %s4565_s19 = sshll.u32 %s424_s4, 5 }
 0x101   : > { %v3360_v33 = vld [vmem:[%s4277_s17 + $0x134] ss:$24 sps:$4 sm:$0xff]   ;;  %s4582_s7 = scalar_lea.vmem [#allocation11], %s4565_s19  ;;  %s4594_s0 = scalar_lea.vmem [#allocation10], %s4565_s19 }
 0x102   : > { %1667 = vmatpush1.bf16.msra.mxu1 %v3263_v34  ;;  %v3355_v34 = vld [vmem:[%s4277_s17 + $0x128] ss:$24 sps:$4 sm:$0xff]   ;;  %s4601_s29 = scalar_lea.vmem [#allocation13], %s4565_s19  ;;  %s2180_s28 = scalar_lea.sflag [#allocation4], %s424_s4 }
 0x103   : > { %1720 = vmatpush1.bf16.msra.mxu0 %v3264_v35  ;;  %1668 = vmatprep.subr.bf16.mxu1 %v3265_v36  ;;  %v3358_v35 = vld [vmem:[%s4277_s17 + $0x130] ss:$24 sps:$4 sm:$0xff]   ;;  %v3363_v36 = vld [vmem:[%s4277_s17 + $0x15c] ss:$24 sps:$4 sm:$0xff]   ;;  %s4642_s13 = scalar_lea.sflag [#allocation12], %s365_s2 }
 0x104   : > { %1721 = vmatprep.subr.bf16.mxu0 %v3267_v37  ;;  %v3366_v37 = vld [vmem:[%s4277_s17 + $0x164] ss:$24 sps:$4 sm:$0xff]  }
 0x106   : > { %1669 = vmatpush1.bf16.msra.mxu1 %v3269_v38  ;;  %v3361_v38 = vld [vmem:[%s4277_s17 + $0x158] ss:$24 sps:$4 sm:$0xff]  }
 0x107   : > { %1722 = vmatpush1.bf16.msra.mxu0 %v3270_v39  ;;  %1670 = vmatprep.subr.bf16.mxu1 %v3271_v40  ;;  %v3364_v39 = vld [vmem:[%s4277_s17 + $0x160] ss:$24 sps:$4 sm:$0xff]   ;;  %v3369_v40 = vld [vmem:[%s4277_s17 + $0x18c] ss:$24 sps:$4 sm:$0xff]  }
 0x108   : > { %1723 = vmatprep.subr.bf16.mxu0 %v3273_v41  ;;  %v3372_v41 = vld [vmem:[%s4277_s17 + $0x194] ss:$24 sps:$4 sm:$0xff]  }
 0x10a   : > { %1671 = vmatpush1.bf16.msra.mxu1 %v3275_v42  ;;  %v3367_v42 = vld [vmem:[%s4277_s17 + $0x188] ss:$24 sps:$4 sm:$0xff]  }
 0x10b   : > { %1724 = vmatpush1.bf16.msra.mxu0 %v3276_v43  ;;  %1672 = vmatprep.subr.bf16.mxu1 %v3277_v44  ;;  %v3370_v43 = vld [vmem:[%s4277_s17 + $0x190] ss:$24 sps:$4 sm:$0xff]   ;;  %v3375_v44 = vld [vmem:[%s4277_s17 + $0x1bc] ss:$24 sps:$4 sm:$0xff]  }
 0x10c   : > { %1725 = vmatprep.subr.bf16.mxu0 %v3279_v45  ;;  %v3378_v45 = vld [vmem:[%s4277_s17 + $0x1c4] ss:$24 sps:$4 sm:$0xff]  }
 0x10e   : > { %1673 = vmatpush1.bf16.msra.mxu1 %v3281_v46  ;;  %v3373_v46 = vld [vmem:[%s4277_s17 + $0x1b8] ss:$24 sps:$4 sm:$0xff]  }
 0x10f   : > { %1726 = vmatpush1.bf16.msra.mxu0 %v3282_v47  ;;  %1674 = vmatprep.subr.bf16.mxu1 %v3283_v49  ;;  %v3376_v47 = vld [vmem:[%s4277_s17 + $0x1c0] ss:$24 sps:$4 sm:$0xff]   ;;  %v3384_v49 = vld [vmem:[%s4277_s17 + $0x1f4] ss:$24 sps:$4 sm:$0xff]  }
 0x110   : > { %1727 = vmatprep.subr.bf16.mxu0 %v3285_v51  ;;  %v3379_v51 = vld [vmem:[%s4277_s17 + $0x1e8] ss:$24 sps:$4 sm:$0xff]  }
 0x112   : > { %1675 = vmatpush1.bf16.msra.mxu1 %v3287_v52  ;;  %v3382_v52 = vld [vmem:[%s4277_s17 + $0x1f0] ss:$24 sps:$4 sm:$0xff]  }
 0x113   : > { %1728 = vmatpush1.bf16.msra.mxu0 %v3288_v53  ;;  %1676 = vmatprep.subr.bf16.mxu1 %v3289_v54  ;;  %v3387_v53 = vld [vmem:[%s4277_s17 + $0x21c] ss:$24 sps:$4 sm:$0xff]  }
 0x114   : > { %1729 = vmatprep.subr.bf16.mxu0 %v3291_v55  ;;  %v3390_v54 = vld [vmem:[%s4277_s17 + $0x224] ss:$24 sps:$4 sm:$0xff]   ;;  %v3385_v55 = vld [vmem:[%s4277_s17 + $0x218] ss:$24 sps:$4 sm:$0xff]  }
 0x116   : > { %1677 = vmatpush1.bf16.msra.mxu1 %v3293_v56  ;;  %v3388_v56 = vld [vmem:[%s4277_s17 + $0x220] ss:$24 sps:$4 sm:$0xff]  }
 0x117   : > { %1730 = vmatpush1.bf16.msra.mxu0 %v3294_v57  ;;  %1678 = vmatprep.subr.bf16.mxu1 %v3295_v58  ;;  %v3393_v57 = vld [vmem:[%s4277_s17 + $0x24c] ss:$24 sps:$4 sm:$0xff]  }
 0x118   : > { %1731 = vmatprep.subr.bf16.mxu0 %v3297_v59  ;;  %v3396_v58 = vld [vmem:[%s4277_s17 + $0x254] ss:$24 sps:$4 sm:$0xff]   ;;  %v3391_v59 = vld [vmem:[%s4277_s17 + $0x248] ss:$24 sps:$4 sm:$0xff]  }
 0x11a   : > { %1679 = vmatpush1.bf16.msra.mxu1 %v3299_v60  ;;  %v3394_v60 = vld [vmem:[%s4277_s17 + $0x250] ss:$24 sps:$4 sm:$0xff]  }
 0x11b   : > { %1732 = vmatpush1.bf16.msra.mxu0 %v3300_v61  ;;  %1680 = vmatprep.subr.bf16.mxu1 %v3301_v62  ;;  %v3399_v61 = vld [vmem:[%s4277_s17 + $0x27c] ss:$24 sps:$4 sm:$0xff]  }
 0x11c   : > { %1733 = vmatprep.subr.bf16.mxu0 %v3303_v63  ;;  %v3402_v62 = vld [vmem:[%s4277_s17 + $0x284] ss:$24 sps:$4 sm:$0xff]   ;;  %v3397_v63 = vld [vmem:[%s4277_s17 + $0x278] ss:$24 sps:$4 sm:$0xff]  }
 0x11e   : > { %1681 = vmatpush1.bf16.msra.mxu1 %v3305_v0  ;;  %v3400_v0 = vld [vmem:[%s4277_s17 + $0x280] ss:$24 sps:$4 sm:$0xff]  }
 0x11f   : > { %1734 = vmatpush1.bf16.msra.mxu0 %v3306_v1  ;;  %1756 = vmatprep.subr.bf16.mxu1 %v3315_v2  ;;  %v3405_v1 = vld [vmem:[%s4277_s17 + $0x2ac] ss:$24 sps:$4 sm:$0xff]  }
 0x120   : > { %1862 = vmatprep.subr.bf16.mxu0 %v3318_v3  ;;  %v3408_v2 = vld [vmem:[%s4277_s17 + $0x2b4] ss:$24 sps:$4 sm:$0xff]   ;;  %v3403_v3 = vld [vmem:[%s4277_s17 + $0x2a8] ss:$24 sps:$4 sm:$0xff]  }
 0x121   : > { %1683 = vmatmul.mubr.bf16.vlgmr.msra.gmra.mrb[0].mxu1 %v4371_v4 }
 0x122   : > { %1736 = vmatmul.mubr.bf16.vlgmr.msra.gmra.mrb[0].mxu0 %v4374_v5  ;;  %1757 = vmatpush1.bf16.msra.mxu1 %v3313_v6  ;;  %v3406_v6 = vld [vmem:[%s4277_s17 + $0x2b0] ss:$24 sps:$4 sm:$0xff]  }
 0x123   : > { %1863 = vmatpush1.bf16.msra.mxu0 %v3316_v7  ;;  %1758 = vmatprep.subr.bf16.mxu1 %v3321_v8  ;;  %v3411_v7 = vld [vmem:[%s4277_s17 + $0x2dc] ss:$24 sps:$4 sm:$0xff]  }
 0x124   : > { %1864 = vmatprep.subr.bf16.mxu0 %v3324_v9  ;;  %1692 = vmatprep.mubr.bf16.mxu1 %v4381_v10  ;;  %v3414_v8 = vld [vmem:[%s4277_s17 + $0x2e4] ss:$24 sps:$4 sm:$0xff]   ;;  %v3409_v9 = vld [vmem:[%s4277_s17 + $0x2d8] ss:$24 sps:$4 sm:$0xff]  }
 0x125   : > { %1745 = vmatprep.mubr.bf16.mxu0 %v4384_v11 }
 0x126   : > { %1759 = vmatpush1.bf16.msra.mxu1 %v3319_v12  ;;  %v3412_v12 = vld [vmem:[%s4277_s17 + $0x2e0] ss:$24 sps:$4 sm:$0xff]  }
 0x127   : > { %1865 = vmatpush1.bf16.msra.mxu0 %v3322_v13  ;;  %1760 = vmatprep.subr.bf16.mxu1 %v3333_v14  ;;  %v3417_v13 = vld [vmem:[%s4277_s17 + $0x30c] ss:$24 sps:$4 sm:$0xff]  }
 0x128   : > { %1866 = vmatprep.subr.bf16.mxu0 %v3336_v15  ;;  %v3420_v14 = vld [vmem:[%s4277_s17 + $0x314] ss:$24 sps:$4 sm:$0xff]   ;;  %v3415_v15 = vld [vmem:[%s4277_s17 + $0x308] ss:$24 sps:$4 sm:$0xff]  }
 0x129   : > { %1693 = vmatmul.mubr.bf16.gmra.mrb[4].mxu1 %v4395_v16 }
 0x12a   : > { %1746 = vmatmul.mubr.bf16.gmra.mrb[4].mxu0 %v4398_v17  ;;  %1761 = vmatpush1.bf16.msra.mxu1 %v3331_v18  ;;  %v3418_v18 = vld [vmem:[%s4277_s17 + $0x310] ss:$24 sps:$4 sm:$0xff]  }
 0x12b   : > { %1867 = vmatpush1.bf16.msra.mxu0 %v3334_v19  ;;  %1762 = vmatprep.subr.bf16.mxu1 %v3339_v20  ;;  %v3423_v19 = vld [vmem:[%s4277_s17 + $0x33c] ss:$24 sps:$4 sm:$0xff]  }
 0x12c   : > { %1868 = vmatprep.subr.bf16.mxu0 %v3342_v21  ;;  %1788 = vmatprep.mubr.bf16.mxu1 %v4345_v48  ;;  %v3426_v20 = vld [vmem:[%s4277_s17 + $0x344] ss:$24 sps:$4 sm:$0xff]   ;;  %v3421_v21 = vld [vmem:[%s4277_s17 + $0x338] ss:$24 sps:$4 sm:$0xff]  }
 0x12d   : > { %1894 = vmatprep.mubr.bf16.mxu0 %v4345_v48  ;;  %v3381_v48 = vld [vmem:[%s4277_s17 + $0x1ec] ss:$24 sps:$4 sm:$0xff]  }
 0x12e   : > { %1763 = vmatpush1.bf16.msra.mxu1 %v3337_v22  ;;  %v3424_v22 = vld [vmem:[%s4277_s17 + $0x340] ss:$24 sps:$4 sm:$0xff]  }
 0x12f   : > { %1869 = vmatpush1.bf16.msra.mxu0 %v3340_v23  ;;  %1764 = vmatprep.subr.bf16.mxu1 %v3345_v24  ;;  %v3429_v23 = vld [vmem:[%s4277_s17 + $0x36c] ss:$24 sps:$4 sm:$0xff]  }
 0x130   : > { %1870 = vmatprep.subr.bf16.mxu0 %v3348_v25  ;;  %v3432_v24 = vld [vmem:[%s4277_s17 + $0x374] ss:$24 sps:$4 sm:$0xff]   ;;  %v3430_v25 = vld [vmem:[%s4277_s17 + $0x370] ss:$24 sps:$4 sm:$0xff]  }
 0x132   : > { %1765 = vmatpush1.bf16.msra.mxu1 %v3343_v26  ;;  %v3435_v26 = vld [vmem:[%s4277_s17 + $0x39c] ss:$24 sps:$4 sm:$0xff]  }
 0x133   : > { %1871 = vmatpush1.bf16.msra.mxu0 %v3346_v27  ;;  %1766 = vmatprep.subr.bf16.mxu1 %v3351_v28  ;;  %v3438_v27 = vld [vmem:[%s4277_s17 + $0x3a4] ss:$24 sps:$4 sm:$0xff]   ;;  %v3436_v28 = vld [vmem:[%s4277_s17 + $0x3a0] ss:$24 sps:$4 sm:$0xff]  }
 0x134   : > { %1872 = vmatprep.subr.bf16.mxu0 %v3354_v29  ;;  %v3441_v29 = vld [vmem:[%s4277_s17 + $0x3cc] ss:$24 sps:$4 sm:$0xff]  }
 0x136   : > { %1767 = vmatpush1.bf16.msra.mxu1 %v3349_v30  ;;  %v3444_v30 = vld [vmem:[%s4277_s17 + $0x3d4] ss:$24 sps:$4 sm:$0xff]  }
 0x137   : > { %1873 = vmatpush1.bf16.msra.mxu0 %v3352_v31  ;;  %1768 = vmatprep.subr.bf16.mxu1 %v3357_v32  ;;  %v3442_v31 = vld [vmem:[%s4277_s17 + $0x3d0] ss:$24 sps:$4 sm:$0xff]   ;;  %v3447_v32 = vld [vmem:[%s4277_s17 + $0x3fc] ss:$24 sps:$4 sm:$0xff]  }
 0x138   : > { %1874 = vmatprep.subr.bf16.mxu0 %v3360_v33  ;;  %v3450_v33 = vld [vmem:[%s4277_s17 + $0x404] ss:$24 sps:$4 sm:$0xff]  }
 0x13a   : > { %1769 = vmatpush1.bf16.msra.mxu1 %v3355_v34  ;;  %v3445_v34 = vld [vmem:[%s4277_s17 + $0x3f8] ss:$24 sps:$4 sm:$0xff]  }
 0x13b   : > { %1875 = vmatpush1.bf16.msra.mxu0 %v3358_v35  ;;  %1770 = vmatprep.subr.bf16.mxu1 %v3363_v36  ;;  %v3448_v35 = vld [vmem:[%s4277_s17 + $0x400] ss:$24 sps:$4 sm:$0xff]   ;;  %v3456_v36 = vld [vmem:[%s4277_s17 + $0x434] ss:$24 sps:$4 sm:$0xff]  }
 0x13c   : > { %1876 = vmatprep.subr.bf16.mxu0 %v3366_v37  ;;  %v3451_v37 = vld [vmem:[%s4277_s17 + $0x428] ss:$24 sps:$4 sm:$0xff]  }
 0x13e   : > { %1771 = vmatpush1.bf16.msra.mxu1 %v3361_v38  ;;  %v3454_v38 = vld [vmem:[%s4277_s17 + $0x430] ss:$24 sps:$4 sm:$0xff]  }
 0x13f   : > { %1877 = vmatpush1.bf16.msra.mxu0 %v3364_v39  ;;  %1772 = vmatprep.subr.bf16.mxu1 %v3369_v40  ;;  %v3459_v39 = vld [vmem:[%s4277_s17 + $0x45c] ss:$24 sps:$4 sm:$0xff]  }
 0x140   : > { %1878 = vmatprep.subr.bf16.mxu0 %v3372_v41  ;;  %v3462_v40 = vld [vmem:[%s4277_s17 + $0x464] ss:$24 sps:$4 sm:$0xff]   ;;  %v3457_v41 = vld [vmem:[%s4277_s17 + $0x458] ss:$24 sps:$4 sm:$0xff]  }
 0x142   : > { %1773 = vmatpush1.bf16.msra.mxu1 %v3367_v42  ;;  %v3460_v42 = vld [vmem:[%s4277_s17 + $0x460] ss:$24 sps:$4 sm:$0xff]  }
 0x143   : > { %1879 = vmatpush1.bf16.msra.mxu0 %v3370_v43  ;;  %1774 = vmatprep.subr.bf16.mxu1 %v3375_v44  ;;  %v3465_v43 = vld [vmem:[%s4277_s17 + $0x48c] ss:$24 sps:$4 sm:$0xff]  }
 0x144   : > { %1880 = vmatprep.subr.bf16.mxu0 %v3378_v45  ;;  %v3468_v44 = vld [vmem:[%s4277_s17 + $0x494] ss:$24 sps:$4 sm:$0xff]   ;;  %v3463_v45 = vld [vmem:[%s4277_s17 + $0x488] ss:$24 sps:$4 sm:$0xff]  }
 0x146   : > { %1775 = vmatpush1.bf16.msra.mxu1 %v3373_v46  ;;  %v3466_v46 = vld [vmem:[%s4277_s17 + $0x490] ss:$24 sps:$4 sm:$0xff]  }
 0x147   : > { %1881 = vmatpush1.bf16.msra.mxu0 %v3376_v47  ;;  %1776 = vmatprep.subr.bf16.mxu1 %v3381_v48  ;;  %v3471_v47 = vld [vmem:[%s4277_s17 + $0x4bc] ss:$24 sps:$4 sm:$0xff]  }
 0x148   : > { %1882 = vmatprep.subr.bf16.mxu0 %v3384_v49  ;;  %v3474_v48 = vld [vmem:[%s4277_s17 + $0x4c4] ss:$24 sps:$4 sm:$0xff]   ;;  %v3469_v49 = vld [vmem:[%s4277_s17 + $0x4b8] ss:$24 sps:$4 sm:$0xff]  }
 0x14a   : > { %1777 = vmatpush1.bf16.msra.mxu1 %v3379_v51  ;;  %v3472_v51 = vld [vmem:[%s4277_s17 + $0x4c0] ss:$24 sps:$4 sm:$0xff]  }
 0x14b   : > { %1883 = vmatpush1.bf16.msra.mxu0 %v3382_v52  ;;  %1778 = vmatprep.subr.bf16.mxu1 %v3387_v53  ;;  %v3477_v52 = vld [vmem:[%s4277_s17 + $0x4ec] ss:$24 sps:$4 sm:$0xff]  }
 0x14c   : > { %1884 = vmatprep.subr.bf16.mxu0 %v3390_v54  ;;  %v3480_v53 = vld [vmem:[%s4277_s17 + $0x4f4] ss:$24 sps:$4 sm:$0xff]   ;;  %v3475_v54 = vld [vmem:[%s4277_s17 + $0x4e8] ss:$24 sps:$4 sm:$0xff]  }
 0x14e   : > { %1779 = vmatpush1.bf16.msra.mxu1 %v3385_v55  ;;  %v3478_v55 = vld [vmem:[%s4277_s17 + $0x4f0] ss:$24 sps:$4 sm:$0xff]  }
 0x14f   : > { %1885 = vmatpush1.bf16.msra.mxu0 %v3388_v56  ;;  %1780 = vmatprep.subr.bf16.mxu1 %v3393_v57  ;;  %v3483_v56 = vld [vmem:[%s4277_s17 + $0x51c] ss:$24 sps:$4 sm:$0xff]  }
 0x150   : > { %1886 = vmatprep.subr.bf16.mxu0 %v3396_v58  ;;  %v3486_v57 = vld [vmem:[%s4277_s17 + $0x524] ss:$24 sps:$4 sm:$0xff]   ;;  %v3481_v58 = vld [vmem:[%s4277_s17 + $0x518] ss:$24 sps:$4 sm:$0xff]  }
 0x152   : > { %1781 = vmatpush1.bf16.msra.mxu1 %v3391_v59  ;;  %v3484_v59 = vld [vmem:[%s4277_s17 + $0x520] ss:$24 sps:$4 sm:$0xff]  }
 0x153   : > { %1887 = vmatpush1.bf16.msra.mxu0 %v3394_v60  ;;  %1782 = vmatprep.subr.bf16.mxu1 %v3399_v61  ;;  %v3489_v60 = vld [vmem:[%s4277_s17 + $0x54c] ss:$24 sps:$4 sm:$0xff]  }
 0x154   : > { %1888 = vmatprep.subr.bf16.mxu0 %v3402_v62  ;;  %v3492_v61 = vld [vmem:[%s4277_s17 + $0x554] ss:$24 sps:$4 sm:$0xff]   ;;  %v3487_v62 = vld [vmem:[%s4277_s17 + $0x548] ss:$24 sps:$4 sm:$0xff]  }
 0x156   : > { %1783 = vmatpush1.bf16.msra.mxu1 %v3397_v63  ;;  %v3490_v63 = vld [vmem:[%s4277_s17 + $0x550] ss:$24 sps:$4 sm:$0xff]  }
 0x157   : > { %1889 = vmatpush1.bf16.msra.mxu0 %v3400_v0  ;;  %1784 = vmatprep.subr.bf16.mxu1 %v3405_v1  ;;  %v3495_v0 = vld [vmem:[%s4277_s17 + $0x57c] ss:$24 sps:$4 sm:$0xff]  }
 0x158   : > { %1890 = vmatprep.subr.bf16.mxu0 %v3408_v2  ;;  %v3498_v1 = vld [vmem:[%s4277_s17 + $0x584] ss:$24 sps:$4 sm:$0xff]   ;;  %v3493_v2 = vld [vmem:[%s4277_s17 + $0x578] ss:$24 sps:$4 sm:$0xff]  }
 0x15a   : > { %1785 = vmatpush1.bf16.msra.mxu1 %v3403_v3  ;;  %v3496_v3 = vld [vmem:[%s4277_s17 + $0x580] ss:$24 sps:$4 sm:$0xff]  }
 0x15b   : > { %1891 = vmatpush1.bf16.msra.mxu0 %v3406_v6  ;;  %1786 = vmatprep.subr.bf16.mxu1 %v3411_v7  ;;  %v3501_v6 = vld [vmem:[%s4277_s17 + $0x5ac] ss:$24 sps:$4 sm:$0xff]  }
 0x15c   : > { %1892 = vmatprep.subr.bf16.mxu0 %v3414_v8  ;;  %v3504_v7 = vld [vmem:[%s4277_s17 + $0x5b4] ss:$24 sps:$4 sm:$0xff]   ;;  %v3499_v8 = vld [vmem:[%s4277_s17 + $0x5a8] ss:$24 sps:$4 sm:$0xff]  }
 0x15e   : > { %1787 = vmatpush1.bf16.msra.mxu1 %v3409_v9  ;;  %v3502_v9 = vld [vmem:[%s4277_s17 + $0x5b0] ss:$24 sps:$4 sm:$0xff]  }
 0x15f   : > { %1893 = vmatpush1.bf16.msra.mxu0 %v3412_v12  ;;  %1809 = vmatprep.subr.bf16.mxu1 %v3417_v13  ;;  %v3507_v12 = vld [vmem:[%s4277_s17 + $0x5dc] ss:$24 sps:$4 sm:$0xff]  }
 0x160   : > { %1915 = vmatprep.subr.bf16.mxu0 %v3420_v14  ;;  %v3510_v13 = vld [vmem:[%s4277_s17 + $0x5e4] ss:$24 sps:$4 sm:$0xff]   ;;  %v3505_v14 = vld [vmem:[%s4277_s17 + $0x5d8] ss:$24 sps:$4 sm:$0xff]  }
 0x161   : > { %1789 = vmatmul.mubr.bf16.vlgmr.msra.gmra.mrb[8].mxu1 %v4371_v4 }
 0x162   : > { %1895 = vmatmul.mubr.bf16.vlgmr.msra.gmra.mrb[8].mxu0 %v4371_v4  ;;  %1810 = vmatpush1.bf16.msra.mxu1 %v3415_v15  ;;  %v3427_v4 = vld [vmem:[%s4277_s17 + $0x368] ss:$24 sps:$4 sm:$0xff]  }
 0x163   : > { %1916 = vmatpush1.bf16.msra.mxu0 %v3418_v18  ;;  %1811 = vmatprep.subr.bf16.mxu1 %v3423_v19  ;;  %v3508_v15 = vld [vmem:[%s4277_s17 + $0x5e0] ss:$24 sps:$4 sm:$0xff]  }
 0x164   : > { %1917 = vmatprep.subr.bf16.mxu0 %v3426_v20  ;;  %1798 = vmatprep.mubr.bf16.mxu1 %v4381_v10 }
 0x165   : > { %1904 = vmatprep.mubr.bf16.mxu0 %v4381_v10  ;;  %v3433_v10 = vld [vmem:[%s4277_s17 + $0x398] ss:$24 sps:$4 sm:$0xff]  }
 0x166   : > { %1812 = vmatpush1.bf16.msra.mxu1 %v3421_v21 }
 0x167   : > { %1918 = vmatpush1.bf16.msra.mxu0 %v3424_v22  ;;  %1813 = vmatprep.subr.bf16.mxu1 %v3429_v23 }
 0x168   : > { %1919 = vmatprep.subr.bf16.mxu0 %v3432_v24 }
 0x169   : > { %1799 = vmatmul.mubr.bf16.gmra.mrb[12].mxu1 %v4395_v16 }
 0x16a   : > { %1905 = vmatmul.mubr.bf16.gmra.mrb[12].mxu0 %v4395_v16  ;;  %1814 = vmatpush1.bf16.msra.mxu1 %v3427_v4  ;;  %v3439_v16 = vld [vmem:[%s4277_s17 + $0x3c8] ss:$24 sps:$4 sm:$0xff]  }
 0x16b   : > { %1920 = vmatpush1.bf16.msra.mxu0 %v3430_v25  ;;  %1815 = vmatprep.subr.bf16.mxu1 %v3435_v26 }
 0x16c   : > { %1921 = vmatprep.subr.bf16.mxu0 %v3438_v27  ;;  %1841 = vmatprep.mubr.bf16.mxu1 %v4349_v50 }
 0x16d   : > { %1947 = vmatprep.mubr.bf16.mxu0 %v4349_v50  ;;  %v3453_v50 = vld [vmem:[%s4277_s17 + $0x42c] ss:$24 sps:$4 sm:$0xff]  }
 0x16e   : > { %1816 = vmatpush1.bf16.msra.mxu1 %v3433_v10 }
 0x16f   : > { %1922 = vmatpush1.bf16.msra.mxu0 %v3436_v28  ;;  %1817 = vmatprep.subr.bf16.mxu1 %v3441_v29 }
 0x170   : > { %1923 = vmatprep.subr.bf16.mxu0 %v3444_v30 }
 0x172   : > { %1818 = vmatpush1.bf16.msra.mxu1 %v3439_v16 }
 0x173   : > { %1924 = vmatpush1.bf16.msra.mxu0 %v3442_v31  ;;  %1819 = vmatprep.subr.bf16.mxu1 %v3447_v32 }
 0x174   : > { %1925 = vmatprep.subr.bf16.mxu0 %v3450_v33 }
 0x176   : > { %1820 = vmatpush1.bf16.msra.mxu1 %v3445_v34 }
 0x177   : > { %1926 = vmatpush1.bf16.msra.mxu0 %v3448_v35  ;;  %1821 = vmatprep.subr.bf16.mxu1 %v3453_v50 }
 0x178   : > { %1927 = vmatprep.subr.bf16.mxu0 %v3456_v36  ;;  %v4549_v36 = vld [vmem:[%s4284_s14 + $0x8] sm:$0xff] }
 0x17a   : > { %1822 = vmatpush1.bf16.msra.mxu1 %v3451_v37  ;;  %v4552_v37 = vld [vmem:[%s4290_s20 + $0x8] sm:$0xff] }
 0x17b   : > { %1928 = vmatpush1.bf16.msra.mxu0 %v3454_v38  ;;  %1823 = vmatprep.subr.bf16.mxu1 %v3459_v39  ;;  %v4555_v38 = vld [vmem:[%s4284_s14] sm:$0xff] }
 0x17c   : > { %1929 = vmatprep.subr.bf16.mxu0 %v3462_v40 }
 0x17e   : > { %1824 = vmatpush1.bf16.msra.mxu1 %v3457_v41  ;;  %v4559_v41 = vld [vmem:[%s4290_s20] sm:$0xff] }
 0x17f   : > { %1930 = vmatpush1.bf16.msra.mxu0 %v3460_v42  ;;  %1825 = vmatprep.subr.bf16.mxu1 %v3465_v43 }
 0x180   : > { %1931 = vmatprep.subr.bf16.mxu0 %v3468_v44 }
 0x182   : > { %1826 = vmatpush1.bf16.msra.mxu1 %v3463_v45 }
 0x183   : > { %1932 = vmatpush1.bf16.msra.mxu0 %v3466_v46  ;;  %1827 = vmatprep.subr.bf16.mxu1 %v3471_v47 }
 0x184   : > { %1933 = vmatprep.subr.bf16.mxu0 %v3474_v48 }
 0x186   : > { %1828 = vmatpush1.bf16.msra.mxu1 %v3469_v49 }
 0x187   : > { %1934 = vmatpush1.bf16.msra.mxu0 %v3472_v51  ;;  %1829 = vmatprep.subr.bf16.mxu1 %v3477_v52 }
 0x188   : > { %1935 = vmatprep.subr.bf16.mxu0 %v3480_v53 }
 0x18a   : > { %1830 = vmatpush1.bf16.msra.mxu1 %v3475_v54 }
 0x18b   : > { %1936 = vmatpush1.bf16.msra.mxu0 %v3478_v55  ;;  %1831 = vmatprep.subr.bf16.mxu1 %v3483_v56  ;;  %v4573_v56 = vld [vmem:[%s4290_s20 + $0x10] sm:$0xff] }
 0x18c   : > { %1937 = vmatprep.subr.bf16.mxu0 %v3486_v57  ;;  %v4576_v57 = vld [vmem:[%s4284_s14 + $0x10] sm:$0xff] }
 0x18e   : > { %1832 = vmatpush1.bf16.msra.mxu1 %v3481_v58  ;;  %v4579_v58 = vld [vmem:[%s4284_s14 + $0x18] sm:$0xff] }
 0x18f   : > { %1938 = vmatpush1.bf16.msra.mxu0 %v3484_v59  ;;  %1833 = vmatprep.subr.bf16.mxu1 %v3489_v60 }
 0x190   : > { %1939 = vmatprep.subr.bf16.mxu0 %v3492_v61 }
 0x192   : > { %1834 = vmatpush1.bf16.msra.mxu1 %v3487_v62 }
 0x193   : > { %1940 = vmatpush1.bf16.msra.mxu0 %v3490_v63  ;;  %1835 = vmatprep.subr.bf16.mxu1 %v3495_v0  ;;  %v4586_v63 = vld [vmem:[%s4290_s20 + $0x18] sm:$0xff] }
 0x194   : > { %1941 = vmatprep.subr.bf16.mxu0 %v3498_v1 }
 0x196   : > { %1836 = vmatpush1.bf16.msra.mxu1 %v3493_v2 }
 0x197   : > { %1942 = vmatpush1.bf16.msra.mxu0 %v3496_v3  ;;  %1837 = vmatprep.subr.bf16.mxu1 %v3501_v6 }
 0x198   : > { %1943 = vmatprep.subr.bf16.mxu0 %v3504_v7 }
 0x19a   : > { %1838 = vmatpush1.bf16.msra.mxu1 %v3499_v8 }
 0x19b   : > { %1944 = vmatpush1.bf16.msra.mxu0 %v3502_v9  ;;  %1839 = vmatprep.subr.bf16.mxu1 %v3507_v12 }
 0x19c   : > { %1945 = vmatprep.subr.bf16.mxu0 %v3510_v13 }
 0x19e   : > { %1840 = vmatpush1.bf16.msra.mxu1 %v3505_v14 }
 0x19f   : > { %1946 = vmatpush1.bf16.msra.mxu0 %v3508_v15 }
 0x1a1   : > { %1842 = vmatmul.mubr.bf16.vlgmr.msra.gmra.mrb[8].mxu1 %v4374_v5 }
 0x1a2   : > { %1948 = vmatmul.mubr.bf16.vlgmr.msra.gmra.mrb[8].mxu0 %v4374_v5  ;;  %1851 = vmatprep.mubr.bf16.mxu1 %v4384_v11 }
 0x1a3   : > { %1957 = vmatprep.mubr.bf16.mxu0 %v4384_v11 }
 0x1a9   : > { %1852 = vmatmul.mubr.bf16.gmra.mrb[12].mxu1 %v4398_v17 }
 0x1aa   : > { %1958 = vmatmul.mubr.bf16.gmra.mrb[12].mxu0 %v4398_v17 }
 0x1f4   : > { %v1684_v18 = vpop.f32.mrb[0].mxu1 }
 0x1f5   : > { %v1737_v19 = vpop.f32.mrb[0].mxu0  ;;  %v1686_v21 = vpop.f32.mrb[1].mxu1 }
 0x1f6   : > { %v1738_v20 = vadd.f32 %v1737_v19, %v1684_v18  ;;  %v1739_v22 = vpop.f32.mrb[1].mxu0  ;;  %v1688_v24 = vpop.f32.mrb[2].mxu1 }
 0x1f7   : > { %v1740_v23 = vadd.f32 %v1739_v22, %v1686_v21  ;;  %v1741_v4 = vpop.f32.mrb[2].mxu0  ;;  %v1690_v5 = vpop.f32.mrb[3].mxu1 }
 0x1f8   : > { %v1742_v25 = vadd.f32 %v1741_v4, %v1688_v24  ;;  %v1743_v26 = vpop.f32.mrb[3].mxu0  ;;  %1980 = vrot.lane.b32.xlu0 %v1738_v20, %s3817_s11  ;;  %v1976_v52 = vmul.f32 %v4555_v38, %v1738_v20 }
 0x1f9   : > { %v1744_v11 = vadd.f32 %v1743_v26, %v1690_v5  ;;  %v2016_v44 = vmul.f32 %v4555_v38, %v1740_v23 }
 0x1fa   : > { %v1977_v53 = vmul.f32 %v4549_v36, %v1742_v25 }
 0x1fb   : > { %2022 = vrot.lane.b32.xlu1 %v1744_v11, %s3817_s11  ;;  %v2017_v40 = vmul.f32 %v4549_v36, %v1744_v11 }
 0x1fc   : > { %2020 = vrot.lane.b32.xlu0 %v1740_v23, %s3817_s11  ;;  %v1694_v17 = vpop.f32.mrb[4].mxu1 }
 0x1fd   : > { %v1747_v27 = vpop.f32.mrb[4].mxu0  ;;  %v1696_v29 = vpop.f32.mrb[5].mxu1 }
 0x1fe   : > { %v1748_v10 = vadd.f32 %v1747_v27, %v1694_v17  ;;  %v1749_v28 = vpop.f32.mrb[5].mxu0  ;;  %v1698_v16 = vpop.f32.mrb[6].mxu1 }
 0x1ff   : > { %v4540_v30 = vadd.f32 %v1749_v28, %v1696_v29  ;;  %v1751_v31 = vpop.f32.mrb[6].mxu0  ;;  %v1700_v33 = vpop.f32.mrb[7].mxu1 }
 0x200   : > { %1982 = vrot.lane.b32.xlu0 %v1742_v25, %s3817_s11  ;;  %1984 = vrot.lane.b32.xlu1 %v1748_v10, %s3817_s11  ;;  %v1752_v32 = vadd.f32 %v1751_v31, %v1698_v16  ;;  %v1753_v34 = vpop.f32.mrb[7].mxu0  ;;  %v1978_v8 = vmul.f32 %v4576_v57, %v1748_v10 }
 0x201   : > { %v1754_v35 = vadd.f32 %v1753_v34, %v1700_v33  ;;  %v2018_v4 = vmul.f32 %v4576_v57, %v4540_v30 }
 0x202   : > { %v1979_v9 = vmul.f32 %v4579_v58, %v1752_v32 }
 0x203   : > { %v2019_v25 = vmul.f32 %v4579_v58, %v1754_v35 }
 0x204   : > { %2024 = vrot.lane.b32.xlu0 %v4540_v30, %s3817_s11  ;;  %1986 = vrot.lane.b32.xlu1 %v1752_v32, %s3817_s11 }
 0x208   : > { %2026 = vrot.lane.b32.xlu1 %v1754_v35, %s3817_s11 }
 0x26a   : > { %v1981_v50 = vpop.permute.xlu0 %1980 }
 0x26b   : > { %v1988_v47 = vmul.f32 %v1981_v50, %v4559_v41 }
 0x26d   : > { %v2023_v39 = vpop.permute.xlu1 %2022  ;;  %v1992_v59 = vadd.f32 %v1988_v47, %v1976_v52 }
 0x26e   : > { %v2029_v42 = vmul.f32 %v2023_v39, %v4552_v37  ;;  %v2021_v43 = vpop.permute.xlu0 %2020 }
 0x26f   : > { %v2028_v45 = vmul.f32 %v2021_v43, %v4559_v41 }
 0x270   : > { %v2033_v46 = vadd.f32 %v2029_v42, %v2017_v40 }
 0x271   : > { %v2032_v48 = vadd.f32 %v2028_v45, %v2016_v44 }
 0x272   : > { %v1983_v49 = vpop.permute.xlu0 %1982  ;;  %v1985_v51 = vpop.permute.xlu1 %1984 }
 0x273   : > { %v2894_v54 = vpack.c.bf16 %v2033_v46, %v2032_v48  ;;  %v1989_v55 = vmul.f32 %v1983_v49, %v4552_v37  ;;  %v1990_v0 = vmul.f32 %v1985_v51, %v4573_v56 }
 0x274   : > { %v1843_v61 = vpop.f32.mrb[8].mxu1 }
 0x275   : > { %2895 = vst [vmem:[%s4582_s7] sm:$0xff] %v2894_v54   ;;  %v1993_v60 = vadd.f32 %v1989_v55, %v1977_v53  ;;  %v1949_v62 = vpop.f32.mrb[8].mxu0  ;;  %v1845_v7 = vpop.f32.mrb[9].mxu1  ;;  %v1994_v20 = vadd.f32 %v1990_v0, %v1978_v8 }
 0x276   : > { %v1951_v1 = vpop.f32.mrb[9].mxu0  ;;  %2121 = vrot.lane.b32.xlu0 %v1949_v62, %s3817_s11  ;;  %v2025_v2 = vpop.permute.xlu0 %2024  ;;  %v2117_v42 = vmul.f32 %v4555_v38, %v1949_v62  ;;  %v2076_v51 = vmul.f32 %v4555_v38, %v1845_v7 }
 0x277   : > { %v2884_v3 = vpack.c.bf16 %v1993_v60, %v1992_v59  ;;  %v1987_v6 = vpop.permute.xlu1 %1986  ;;  %v1847_v13 = vpop.f32.mrb[10].mxu1  ;;  %v2030_v21 = vmul.f32 %v2025_v2, %v4573_v56 }
 0x278   : > { %v1991_v12 = vmul.f32 %v1987_v6, %v4586_v63  ;;  %v1953_v14 = vpop.f32.mrb[10].mxu0  ;;  %v2904_v15 = vpack.c.bf16 %v1847_v13, %v1843_v61  ;;  %v1849_v18 = vpop.f32.mrb[11].mxu1 }
 0x279   : > { %2885 = vst [vmem:[%s4594_s0] sm:$0xff] %v2884_v3   ;;  %v1955_v19 = vpop.f32.mrb[11].mxu0  ;;  %2123 = vrot.lane.b32.xlu1 %v1953_v14, %s3817_s11  ;;  %v2034_v27 = vadd.f32 %v2030_v21, %v2018_v4  ;;  %v2118_v43 = vmul.f32 %v4549_v36, %v1953_v14  ;;  %v2077_v52 = vmul.f32 %v4549_v36, %v1849_v18 }
 0x27a   : > { %v1995_v22 = vadd.f32 %v1991_v12, %v1979_v9  ;;  %v2934_v23 = vpack.c.bf16 %v1955_v19, %v1951_v1  ;;  %2080 = vrot.lane.b32.xlu0 %v1845_v7, %s3817_s11  ;;  %2905 = vst [vmem:[%s4601_s29] sm:$0xff] %v2904_v15  }
 0x27b   : > { %v2027_v24 = vpop.permute.xlu1 %2026 }
 0x27c   : > { %v2889_v26 = vpack.c.bf16 %v1995_v22, %v1994_v20  ;;  %2948 = vst [vmem:[%s4601_s29 + $0x10] sm:$0xff] %v2934_v23   ;;  %v2031_v5 = vmul.f32 %v2027_v24, %v4586_v63  ;;  %v1853_v11 = vpop.f32.mrb[12].mxu1 }
 0x27d   : > { %2082 = vrot.lane.b32.xlu1 %v1849_v18, %s3817_s11  ;;  %v1959_v17 = vpop.f32.mrb[12].mxu0  ;;  %v1855_v28 = vpop.f32.mrb[13].mxu1 }
 0x27e   : > { %2941 = vst [vmem:[%s4594_s0 + $0x8] sm:$0xff] %v2889_v26   ;;  %v2035_v10 = vadd.f32 %v2031_v5, %v2019_v25  ;;  %v1961_v29 = vpop.f32.mrb[13].mxu0  ;;  %2084 = vrot.lane.b32.xlu0 %v1855_v28, %s3817_s11  ;;  %v1857_v30 = vpop.f32.mrb[14].mxu1  ;;  %v2078_v0 = vmul.f32 %v4576_v57, %v1855_v28  ;;  %v2119_v7 = vmul.f32 %v4576_v57, %v1959_v17 }
 0x27f   : > { %v1963_v16 = vpop.f32.mrb[14].mxu0  ;;  %v2909_v32 = vpack.c.bf16 %v1857_v30, %v1853_v11  ;;  %v1859_v33 = vpop.f32.mrb[15].mxu1 }
 0x280   : > { %v2899_v31 = vpack.c.bf16 %v2035_v10, %v2034_v27  ;;  %v1965_v34 = vpop.f32.mrb[15].mxu0  ;;  %v2120_v8 = vmul.f32 %v4579_v58, %v1963_v16 }
 0x281   : > { %v2939_v35 = vpack.c.bf16 %v1965_v34, %v1961_v29  ;;  %2086 = vrot.lane.b32.xlu1 %v1859_v33, %s3817_s11  ;;  %2943 = vst [vmem:[%s4601_s29 + $0x8] sm:$0xff] %v2909_v32  }
 0x282   : > { %2942 = vst [vmem:[%s4582_s7 + $0x8] sm:$0xff] %v2899_v31   ;;  %2125 = vrot.lane.b32.xlu0 %v1959_v17, %s3817_s11 }
 0x283   : > { %2949 = vst [vmem:[%s4601_s29 + $0x18] sm:$0xff] %v2939_v35  }
 0x285   : > { %2127 = vrot.lane.b32.xlu1 %v1963_v16, %s3817_s11 }
 0x2e8   : > { %v2122_v50 = vpop.permute.xlu0 %2121 }
 0x2e9   : > { %v2129_v39 = vmul.f32 %v2122_v50, %v4559_v41 }
 0x2eb   : > { %v2124_v40 = vpop.permute.xlu1 %2123  ;;  %v2133_v46 = vadd.f32 %v2129_v39, %v2117_v42 }
 0x2ec   : > { %v2130_v44 = vmul.f32 %v2124_v40, %v4552_v37  ;;  %v2081_v45 = vpop.permute.xlu0 %2080 }
 0x2ed   : > { %v2088_v48 = vmul.f32 %v2081_v45, %v4559_v41  ;;  %v2079_v41 = vmul.f32 %v4579_v58, %v1859_v33 }
 0x2ee   : > { %v2134_v47 = vadd.f32 %v2130_v44, %v2118_v43 }
 0x2ef   : > { %v2083_v49 = vpop.permute.xlu1 %2082  ;;  %v2092_v59 = vadd.f32 %v2088_v48, %v2076_v51 }
 0x2f0   : > { %v2924_v53 = vpack.c.bf16 %v2134_v47, %v2133_v46  ;;  %v2089_v54 = vmul.f32 %v2083_v49, %v4552_v37  ;;  %v2085_v55 = vpop.permute.xlu0 %2084 }
 0x2f1   : > { %v2090_v61 = vmul.f32 %v2085_v55, %v4573_v56 }
 0x2f2   : > { %2946 = vst [vmem:[%s4582_s7 + $0x10] sm:$0xff] %v2924_v53   ;;  %v2093_v60 = vadd.f32 %v2089_v54, %v2077_v52 }
 0x2f3   : > { %v2087_v62 = vpop.permute.xlu1 %2086  ;;  %v2094_v37 = vadd.f32 %v2090_v61, %v2078_v0 }
 0x2f4   : > { %v2914_v1 = vpack.c.bf16 %v2093_v60, %v2092_v59  ;;  %v2091_v38 = vmul.f32 %v2087_v62, %v4586_v63  ;;  %v2126_v36 = vpop.permute.xlu0 %2125 }
 0x2f5   : > { %v2131_v3 = vmul.f32 %v2126_v36, %v4573_v56 }
 0x2f6   : > { %2944 = vst [vmem:[%s4594_s0 + $0x10] sm:$0xff] %v2914_v1   ;;  %v2095_v2 = vadd.f32 %v2091_v38, %v2079_v41 }
 0x2f7   : > { %v2128_v6 = vpop.permute.xlu1 %2127  ;;  %v2135_v13 = vadd.f32 %v2131_v3, %v2119_v7 }
 0x2f8   : > { %v2919_v9 = vpack.c.bf16 %v2095_v2, %v2094_v37  ;;  %v2132_v12 = vmul.f32 %v2128_v6, %v4586_v63 }
 0x2fa   : > { %2945 = vst [vmem:[%s4594_s0 + $0x18] sm:$0xff] %v2919_v9   ;;  %v2136_v14 = vadd.f32 %v2132_v12, %v2120_v8 }
 0x2fc   : > { %v2929_v15 = vpack.c.bf16 %v2136_v14, %v2135_v13 }
 0x2fe   : > { %2947 = vst [vmem:[%s4582_s7 + $0x18] sm:$0xff] %v2929_v15  }
 0x2ff   : > { %s4870_s9 = sld [smem:[#allocation29_spill]]  ;;  %s4871_s1 = sld [smem:[#allocation30_spill]] }
 0x300   : > { %s4872_s17 = sld [smem:[#allocation31_spill]]  ;;  %s4873_s24 = sld [smem:[#allocation42_spill]] }
 0x301   : > { %s2224_s19 = sshll.u32 %s4594_s0, 4  ;;  %s4874_s5 = sld [smem:[#allocation48_spill]]  ;;  %s2225_s19 = int_to_ptr.vmem [resolvable:$true] %s2224_s19 }
 0x302   : > { %s3818_s27 = smov 256   ;;  %s3822_s0 = smov [#allocation14]  }
 0x305   : > { %s2835_s18 = sshll.u32 %s4870_s9, 2  ;;  %s2878_s14 = sshll.u32 %s4871_s1, 4 }
 0x306   : > { %s2203_s6 = sadd.s32 %s2878_s14, %s2835_s18  ;;  %s2837_s20 = sshll.u32 %s4872_s17, 5 }
 0x307   : > { %s2205_s11 = sadd.s32 %s2837_s20, %s2203_s6  ;;  %p4875_p7 = scmp.ne.s32.totalorder %s4873_s24, 0 }
 0x308   : > { %s4648_s16 = sshll.u32 %s2205_s11, 6  ;;  %s3819_s9 = smov 512  }
 0x309   : > { %s2207_s12 = scalar_lea.hbm %s4874_s5, %s4648_s16  ;;  %2985 = sst [smem:[#allocation15]] (%p4875_p7), %s3818_s27 }
 0x30a   : > { %2986 = sst [smem:[#allocation15 + $0x1]] (%p4875_p7), %s3819_s9  ;;  %s3820_s1 = smov 4  }
 0x30b   : > { %2987 = sst [smem:[#allocation15 + $0x2]] (%p4875_p7), %s3820_s1  ;;  %s3821_s17 = smov 64  }
 0x30c   : > { %2988 = sst [smem:[#allocation15 + $0x3]] (%p4875_p7), %s3821_s17  ;;  %s3823_s18 = smov 0  }
 0x30d   : > { %2989 = sst [smem:[#allocation15 + $0x4]] (%p4875_p7), %s3821_s17 }
 0x30e   : > { %2990 = sst [smem:[#allocation15 + $0x5]] (%p4875_p7), %s3820_s1 }
 0x30f   : > { %2991 = dma.general (%p4875_p7), %s2225_s19, 512, %s2207_s12, %s2180_s28, %s3822_s0, [#allocation15], %s3823_s18, 0  }
 0x310   : > { %s4876_s14 = sld [smem:[#allocation49_spill]]  ;;  %s2274_s20 = sshll.u32 %s4582_s7, 4  ;;  %s2275_s20 = int_to_ptr.vmem [resolvable:$true] %s2274_s20 }
 0x311   : > { %s3824_s11 = smov 256   ;;  %s3825_s12 = smov 512  }
 0x312   : > { %2992 = sst [smem:[#allocation17]] (%p4875_p7), %s3824_s11  ;;  %s3826_s28 = smov 4  }
 0x313   : > { %2993 = sst [smem:[#allocation17 + $0x1]] (%p4875_p7), %s3825_s12  ;;  %s3827_s19 = smov 64  }
 0x314   : > { %2994 = sst [smem:[#allocation17 + $0x2]] (%p4875_p7), %s3826_s28  ;;  %s3828_s2 = smov [#allocation16]  }
 0x315   : > { %2995 = sst [smem:[#allocation17 + $0x3]] (%p4875_p7), %s3827_s19  ;;  %s3829_s4 = smov 0  }
 0x316   : > { %s2257_s6 = scalar_lea.hbm %s4876_s14, %s4648_s16  ;;  %2996 = sst [smem:[#allocation17 + $0x4]] (%p4875_p7), %s3827_s19 }
 0x317   : > { %2997 = sst [smem:[#allocation17 + $0x5]] (%p4875_p7), %s3826_s28 }
 0x318   : > { %2998 = dma.general (%p4875_p7), %s2275_s20, 512, %s2257_s6, %s4642_s13, %s3828_s2, [#allocation17], %s3829_s4, 0  }
 0x319   : > { %s4877_s1 = sld [smem:[#allocation50_spill]]  ;;  %s2324_s0 = sshll.u32 %s4601_s29, 4  ;;  %s2325_s0 = int_to_ptr.vmem [resolvable:$true] %s2324_s0 }
 0x31a   : > { %s3830_s18 = smov 256   ;;  %s3831_s5 = smov 512  }
 0x31b   : > { %2999 = sst [smem:[#allocation19]] (%p4875_p7), %s3830_s18  ;;  %s3832_s27 = smov 4  }
 0x31c   : > { %3000 = sst [smem:[#allocation19 + $0x1]] (%p4875_p7), %s3831_s5  ;;  %s3833_s14 = smov 64  }
 0x31d   : > { %3001 = sst [smem:[#allocation19 + $0x2]] (%p4875_p7), %s3832_s27  ;;  %s3834_s6 = smov [#allocation18]  }
 0x31e   : > { %3002 = sst [smem:[#allocation19 + $0x3]] (%p4875_p7), %s3833_s14 }
 0x31f   : > { %s2307_s17 = scalar_lea.hbm %s4877_s1, %s4648_s16  ;;  %3003 = sst [smem:[#allocation19 + $0x4]] (%p4875_p7), %s3833_s14 }
 0x320   : > { %3004 = sst [smem:[#allocation19 + $0x5]] (%p4875_p7), %s3832_s27  ;;  %s3835_s16 = smov 0  }
 0x321   : > { %3005 = dma.general (%p4875_p7), %s2325_s0, 512, %s2307_s17, %s4642_s13, %s3834_s6, [#allocation19], %s3835_s16, 0  }
 0x322 PF: > { %p3033_p11 = scmp.ge.s32.totalorder %s3805_s15, 2  ;;  %s2352_s29 = sand.u32 1, %s3733_s21  }
 0x323   : > { %p4878_p2 = scmp.ne.s32.totalorder %s4849_s30, 0  ;;  %s2353_s20 = scalar_lea.sflag [#allocation4], %s2352_s29 }
 0x325   : > { %p3023_p6 = pnand %p3033_p11, %p4878_p2 }
 0x327   : > { %3724 = dma.done.wait (!%p3023_p6), %s2353_s20, 512  }
 0x328   : > { %3726 = vsyncadd (!%p3023_p6), %s2353_s20, 4294966784  ;;  %s4879_s11 = sadd.s32 4294967294, %s3805_s15  }
 0x329   : > { %s2361_s12 = sand.u32 1, %s4879_s11  }
 0x32a   : > { %s2362_s28 = scalar_lea.sflag [#allocation12], %s2361_s12 }
 0x32b   : > { %3728 = dma.done.wait (!%p3023_p6), %s2362_s28, 1024  }
 0x32c   : > { %3730 = vsyncadd (!%p3023_p6), %s2362_s28, 4294966272  ;;  %s32_s15 = sadd.s32 1, %s3805_s15   ;;  %s4881_s27 = sld [smem:[#allocation26_spill]] }
 0x32d   : > { %p4715_p3 = scmp.ge.s32.totalorder %s32_s15, 10   ;;  %s4882_s28 = sld [smem:[#allocation27_spill]] }
 0x32e   : > { %s4883_s29 = sld [smem:[#allocation41_spill]]  ;;  %s4884_s30 = sld [smem:[#allocation28_spill]] }
 0x32f   : > { %s4885_s19 = sld [smem:[#allocation43_spill]]  ;;  %s4886_s9 = sld [smem:[#allocation32_spill]] }
 0x330   : > { %s4887_s2 = sld [smem:[#allocation33_spill]]  ;;  %s4888_s11 = sld [smem:[#allocation34_spill]] }
 0x331   : > { %s4889_s12 = sld [smem:[#allocation37_spill]]  ;;  %s4890_s21 = smov %s3737_s22 }
 0x332   : > { %s4891_s4 = sld [smem:[#allocation38_spill]]  ;;  %s4892_s22 = smov %s3741_s23 }
 0x333   : > { %s4893_s14 = sld [smem:[#allocation40_spill]]  ;;  %s4894_s23 = smov %s4099_s3 }
 0x334   : > { %s4895_s24 = smov %s3749_s25  ;;  %s4897_s25 = smov %s3753_s26 }
 0x335   : > { %s4898_s26 = smov %s4160_s10  ;;  %s4899_s7 = smov %s3777_s8 }
 0x336   : > { %s4900_s8 = smov %s4885_s19  ;;  %s4901_s10 = smov %s4887_s2 }
 0x337   :  { %31 = sbr.rel (!%p4715_p3) target bundleno = 27 (0x1b), region = 168 }
 0x338   : > { %s4902_s13 = smov %s4891_s4 }
 0x33e   :  { %2376 = vsyncpa [#allocation3], 1 }
 0x33f   :  { %2378 = vsyncpa [#allocation3 + $0x1], 1 }
 0x340   :  { %2379 = vsyncpa [#allocation6], 1 }
 0x341   :  { %2381 = vsyncpa [#allocation6 + $0x1], 1 }
 0x342   :  { %2382 = vsyncpa [#allocation9], 1 }
 0x343   :  { %2384 = vsyncpa [#allocation9 + $0x1], 1 }
 0x344   :  { %2385 = vsyncpa [#allocation4], 1 }
 0x345   :  { %2387 = vsyncpa [#allocation4 + $0x1], 1 }
 0x346   :  { %2388 = vsyncpa [#allocation12], 1 }
 0x347   :  { %2390 = vsyncpa [#allocation12 + $0x1], 1 }

</bundles_post_ra>
